<compile_context>
chip_gen: v7x
topology: tpu7x:2x2x1
jax: 0.10.0
libtpu: 0.0.40
codegen_flags: <defaults>
</compile_context>

<pallas_src>
import jax
import jax.numpy as jnp
from jax.experimental import pallas as pl
from jax.experimental.pallas import tpu as pltpu

# Hyperparameters (small, consistent with BigramModel.__init__)
VOCAB_SIZE = 65
BLOCK_SIZE = 8          # max sequence length T
N_HEADS = 4
N_LAYERS = 2
N_EMBD = 32
DROPOUT = 0.0           # eval semantics: dropout is identity
HEAD_DIM = N_EMBD // N_HEADS
HIDDEN = 4 * N_EMBD     # = 128, lane-dense
LN_EPS = 1e-5
VOCAB_PAD = 128         # lm_head / logits padded to 128 lanes

# ---- static row offsets inside the two packed weight slabs ----
# "narrow" slab (32 lanes):
TOK_OFF = 0                                   # 128 rows: padded token table
POS_OFF = VOCAB_PAD                           # BLOCK_SIZE rows: positional table
LAYER_NARROW_OFF = POS_OFF + BLOCK_SIZE       # per layer: wq, wk, wv, wo (32 rows each), w2 (128 rows)
NARROW_PER_LAYER = 4 * N_EMBD + HIDDEN
NARROW_ROWS = LAYER_NARROW_OFF + N_LAYERS * NARROW_PER_LAYER
# "wide" slab (128 lanes):
WL_OFF = N_LAYERS * N_EMBD                    # rows 0..: w1 per layer; then lm_head weight
VEC_OFF = WL_OFF + N_EMBD                     # then 8 rows/layer of gains & biases
VEC_PER_LAYER = 8
FIN_VEC_OFF = VEC_OFF + N_LAYERS * VEC_PER_LAYER
WIDE_ROWS = FIN_VEC_OFF + 8


def _layernorm(h, g, b):
    mu = jnp.mean(h, axis=-1, keepdims=True)
    var = jnp.mean((h - mu) ** 2, axis=-1, keepdims=True)
    return (h - mu) * jax.lax.rsqrt(var + LN_EPS) * g + b


# ---------------------------------------------------------------------------
# Fused forward kernel (embeddings + all blocks + final LN + lm_head [+ loss])
# ---------------------------------------------------------------------------
def _make_forward_kernel(seq_len, fuse_loss):
    assert seq_len & (seq_len - 1) == 0, "seq_len must be a power of two"
    # TODO(synk): non-power-of-two T (generate-time cropping) would need div/mod masks.
    log2_t = seq_len.bit_length() - 1
    C = N_EMBD

    def kernel(*refs):
        if fuse_loss:
            oh_ref, narrow_ref, wide_ref, tgt_ref, out_ref, nll_ref = refs
        else:
            oh_ref, narrow_ref, wide_ref, out_ref = refs
        RB = oh_ref.shape[0]                    # rows in this tile (= n_seqs * T)

        # ---- token embedding (one-hot matmul) + positional add (tiled, no matmul) ----
        tok_tbl = narrow_ref[TOK_OFF:TOK_OFF + VOCAB_PAD, :]          # (128, C)
        x = jnp.dot(oh_ref[...], tok_tbl, preferred_element_type=jnp.float32)
        pos = narrow_ref[POS_OFF:POS_OFF + seq_len, :]                # (T, C)
        x = x + jnp.tile(pos, (RB // seq_len, 1))

        # ---- causal + same-sequence additive mask (built once, reused per head/layer) ----
        rr = jax.lax.broadcasted_iota(jnp.int32, (RB, RB), 0)
        cc = jax.lax.broadcasted_iota(jnp.int32, (RB, RB), 1)
        ok = (cc <= rr) & ((rr >> log2_t) == (cc >> log2_t))
        mask_bias = jnp.where(ok, 0.0, -1e30).astype(jnp.float32)

        # ---- per-head lane masks (built once) ----
        lane = jax.lax.broadcasted_iota(jnp.int32, (1, C), 1)
        head_mask = [((lane >= h * HEAD_DIM) & (lane < (h + 1) * HEAD_DIM))
                     .astype(jnp.float32) for h in range(N_HEADS)]

        for l in range(N_LAYERS):       # static unroll; all weights VMEM-resident
            nb0 = LAYER_NARROW_OFF + l * NARROW_PER_LAYER
            wq = narrow_ref[nb0:nb0 + C, :]               # (C, C), scale pre-folded
            wk = narrow_ref[nb0 + C:nb0 + 2 * C, :]
            wv = narrow_ref[nb0 + 2 * C:nb0 + 3 * C, :]
            wo = narrow_ref[nb0 + 3 * C:nb0 + 4 * C, :]
            w2 = narrow_ref[nb0 + 4 * C:nb0 + 4 * C + HIDDEN, :]      # (HIDDEN, C)
            w1 = wide_ref[l * C:(l + 1) * C, :]                       # (C, HIDDEN)
            vec = wide_ref[VEC_OFF + l * VEC_PER_LAYER:
                           VEC_OFF + (l + 1) * VEC_PER_LAYER, :]      # (8, 128)
            ln1_g, ln1_b, bo = vec[0:1, :C], vec[1:2, :C], vec[2:3, :C]
            ln2_g, ln2_b = vec[3:4, :C], vec[4:5, :C]
            b1, b2 = vec[5:6, :], vec[6:7, :C]

            # --- pre-LN multi-head attention (heads via lane masks; no relayouts) ---
            h = _layernorm(x, ln1_g, ln1_b)
            q = jnp.dot(h, wq, preferred_element_type=jnp.float32)    # (RB, C)
            k = jnp.dot(h, wk, preferred_element_type=jnp.float32)
            v = jnp.dot(h, wv, preferred_element_type=jnp.float32)
            y = jnp.zeros_like(x)
            for hh in range(N_HEADS):
                s = jax.lax.dot_general(q, k * head_mask[hh],
                                        (((1,), (1,)), ((), ())),
                                        preferred_element_type=jnp.float32)  # (RB, RB)
                s = s + mask_bias
                s = s - jnp.max(s, axis=-1, keepdims=True)
                p = jnp.exp(s)
                p = p / jnp.sum(p, axis=-1, keepdims=True)   # exact divide (parity)
                y = y + jnp.dot(p, v * head_mask[hh],
                                preferred_element_type=jnp.float32)   # head lanes only
            x = x + jnp.dot(y, wo, preferred_element_type=jnp.float32) + bo

            # --- pre-LN feed-forward: Linear -> ReLU -> Linear ---
            h2 = _layernorm(x, ln2_g, ln2_b)
            m = jnp.maximum(jnp.dot(h2, w1, preferred_element_type=jnp.float32) + b1, 0.0)
            x = x + jnp.dot(m, w2, preferred_element_type=jnp.float32) + b2

        # ---- final LayerNorm + lm_head (vocab padded to 128 lanes, lane-dense store) ----
        fin = wide_ref[FIN_VEC_OFF:FIN_VEC_OFF + 8, :]
        lnf_g, lnf_b, bl = fin[0:1, :C], fin[1:2, :C], fin[2:3, :]
        wl = wide_ref[WL_OFF:WL_OFF + C, :]                            # (C, 128)
        hf = _layernorm(x, lnf_g, lnf_b)
        logits = jnp.dot(hf, wl, preferred_element_type=jnp.float32) + bl
        out_ref[...] = logits

        if fuse_loss:
            # fused cross-entropy: per-row NLL over the valid (unpadded) vocab lanes
            valid = jax.lax.broadcasted_iota(jnp.int32, (1, VOCAB_PAD), 1) < VOCAB_SIZE
            lmax = jnp.max(jnp.where(valid, logits, -1e30), axis=-1, keepdims=True)
            esum = jnp.sum(jnp.where(valid, jnp.exp(logits - lmax), 0.0),
                           axis=-1, keepdims=True)
            lse = lmax + jnp.log(esum)
            tgt_logit = jnp.sum(logits * tgt_ref[...], axis=-1, keepdims=True)
            nll_ref[...] = jnp.broadcast_to(lse - tgt_logit, (RB, VOCAB_PAD))

    return kernel


# ---------------------------------------------------------------------------
# Parameter packing: two slabs (32-lane "narrow", 128-lane "wide")
# ---------------------------------------------------------------------------
def pack_params(params):
    C = N_EMBD
    scale = HEAD_DIM ** -0.5
    blocks = params['blocks']

    def heads_to_cols(w):          # (H, C, hd) -> (C, H*hd), head-major columns
        return jnp.transpose(w, (1, 0, 2)).reshape(C, C)

    def padrow(v):                 # (d,) -> (1, 128) lane-padded row
        return jnp.zeros((1, VOCAB_PAD), jnp.float32).at[0, :v.shape[0]].set(v)

    tok_pad = jnp.zeros((VOCAB_PAD, C), jnp.float32).at[:VOCAB_SIZE].set(params['tok_emb'])
    narrow_rows = [tok_pad, params['pos_emb']]
    for b in blocks:
        narrow_rows += [heads_to_cols(b['wq']) * scale,   # fold 1/sqrt(hd) into Q
                        heads_to_cols(b['wk']),
                        heads_to_cols(b['wv']),
                        b['wo'].reshape(C, C),            # (H*hd, C) head-major rows
                        b['w2']]
    narrow = jnp.concatenate(narrow_rows, axis=0)
    assert narrow.shape == (NARROW_ROWS, C), narrow.shape

    wl_pad = jnp.zeros((C, VOCAB_PAD), jnp.float32).at[:, :VOCAB_SIZE].set(params['wl'])
    wide_rows = [b['w1'] for b in blocks] + [wl_pad]
    for b in blocks:
        wide_rows.append(jnp.concatenate(
            [padrow(b['ln1_g']), padrow(b['ln1_b']), padrow(b['bo']),
             padrow(b['ln2_g']), padrow(b['ln2_b']),
             padrow(b['b1']), padrow(b['b2']),
             jnp.zeros((1, VOCAB_PAD), jnp.float32)], axis=0))          # 8 rows/layer
    wide_rows.append(jnp.concatenate(
        [padrow(params['lnf_g']), padrow(params['lnf_b']), padrow(params['bl']),
         jnp.zeros((5, VOCAB_PAD), jnp.float32)], axis=0))               # 8 rows
    wide = jnp.concatenate(wide_rows, axis=0)
    assert wide.shape == (WIDE_ROWS, VOCAB_PAD), wide.shape
    return narrow, wide


def _num_tensorcores():
    """2 only on a v7x-like 2-TC chip; single-TC (v5e/v6e) -> 1 (no useless grid split)."""
    try:
        kind = jax.devices()[0].device_kind.lower()
    except Exception:
        return 1
    return 2 if "v7" in kind else 1


# ---------------------------------------------------------------------------
# pallas_call wrapper (equivalent of BigramModel.forward)
# ---------------------------------------------------------------------------
def bigram_forward(idx, params, targets=None):
    B, T = idx.shape
    assert 1 <= T <= BLOCK_SIZE and (T & (T - 1)) == 0, "T must be a power-of-two <= block_size"

    narrow, wide = pack_params(params)       # cheap; in real use pack once up front

    nb = _num_tensorcores()
    if nb > 1 and (B % nb != 0 or ((B // nb) * T) % 8 != 0):
        nb = 1
    rows_per_step = (B // nb) * T

    # lane-dense token one-hot replaces the awkward (rows, 1) index tile
    onehot = jax.nn.one_hot(idx.reshape(-1), VOCAB_PAD, dtype=jnp.float32)

    row_spec = pl.BlockSpec((rows_per_step, VOCAB_PAD), lambda i: (i, 0))
    weight_specs = [pl.BlockSpec(narrow.shape, lambda i: (0, 0)),
                    pl.BlockSpec(wide.shape, lambda i: (0, 0))]
    # TODO(synk): pipeline_mode=pl.Buffered(1) on the weight specs would drop the
    # redundant double buffer; negligible at ~140 KB of weights, so omitted for safety.

    cparams = pltpu.CompilerParams(
        dimension_semantics=("parallel",) if nb > 1 else ("arbitrary",))

    if targets is not None:
        tgt_oh = jax.nn.one_hot(targets.reshape(-1), VOCAB_PAD, dtype=jnp.float32)
        logits_pad, nll = pl.pallas_call(
            _make_forward_kernel(T, True),
            out_shape=(jax.ShapeDtypeStruct((B * T, VOCAB_PAD), jnp.float32),
                       jax.ShapeDtypeStruct((B * T, VOCAB_PAD), jnp.float32)),
            grid=(nb,),
            in_specs=[row_spec] + weight_specs + [row_spec],
            out_specs=(row_spec, row_spec),
            compiler_params=cparams,
        )(onehot, narrow, wide, tgt_oh)
        loss = jnp.mean(nll[:, 0])
    else:
        logits_pad = pl.pallas_call(
            _make_forward_kernel(T, False),
            out_shape=jax.ShapeDtypeStruct((B * T, VOCAB_PAD), jnp.float32),
            grid=(nb,),
            in_specs=[row_spec] + weight_specs,
            out_specs=row_spec,
            compiler_params=cparams,
        )(onehot, narrow, wide)
        loss = None

    logits = logits_pad[:, :VOCAB_SIZE].reshape(B, T, VOCAB_SIZE)
    return logits, loss


# ---------------------------------------------------------------------------
# Deterministic parameter init + pure-JAX reference for validation
# ---------------------------------------------------------------------------
def init_params(key):
    def normal(k, shape, scale=0.02):
        return scale * jax.random.normal(k, shape, dtype=jnp.float32)

    keys = iter(jax.random.split(key, 8 + 8 * N_LAYERS))
    params = {
        'tok_emb': normal(next(keys), (VOCAB_SIZE, N_EMBD)),
        'pos_emb': normal(next(keys), (BLOCK_SIZE, N_EMBD)),
        'lnf_g': jnp.ones((N_EMBD,), jnp.float32),
        'lnf_b': jnp.zeros((N_EMBD,), jnp.float32),
        'wl': normal(next(keys), (N_EMBD, VOCAB_SIZE)),
        'bl': jnp.zeros((VOCAB_SIZE,), jnp.float32),
        'blocks': [],
    }
    for _ in range(N_LAYERS):
        blk = {
            'ln1_g': jnp.ones((N_EMBD,), jnp.float32),
            'ln1_b': jnp.zeros((N_EMBD,), jnp.float32),
            'wq': normal(next(keys), (N_HEADS, N_EMBD, HEAD_DIM)),
            'wk': normal(next(keys), (N_HEADS, N_EMBD, HEAD_DIM)),
            'wv': normal(next(keys), (N_HEADS, N_EMBD, HEAD_DIM)),
            'wo': normal(next(keys), (N_HEADS, HEAD_DIM, N_EMBD)),
            'bo': jnp.zeros((N_EMBD,), jnp.float32),
            'ln2_g': jnp.ones((N_EMBD,), jnp.float32),
            'ln2_b': jnp.zeros((N_EMBD,), jnp.float32),
            'w1': normal(next(keys), (N_EMBD, HIDDEN)),
            'b1': jnp.zeros((HIDDEN,), jnp.float32),
            'w2': normal(next(keys), (HIDDEN, N_EMBD)),
            'b2': jnp.zeros((N_EMBD,), jnp.float32),
        }
        params['blocks'].append(blk)
    return params


def reference_forward(idx, params):
    B, T = idx.shape
    x = jnp.take(params['tok_emb'], idx, axis=0) + params['pos_emb'][:T][None]
    mask = jnp.tril(jnp.ones((T, T), dtype=bool))
    for p in params['blocks']:
        h = _layernorm(x, p['ln1_g'], p['ln1_b'])
        q = jnp.einsum('btc,hcd->bhtd', h, p['wq'])
        k = jnp.einsum('btc,hcd->bhtd', h, p['wk'])
        v = jnp.einsum('btc,hcd->bhtd', h, p['wv'])
        att = jnp.einsum('bhtd,bhsd->bhts', q, k) * (HEAD_DIM ** -0.5)
        att = jnp.where(mask[None, None], att, -1e30)
        w = jax.nn.softmax(att, axis=-1)
        y = jnp.einsum('bhts,bhsd->bhtd', w, v)
        x = x + jnp.einsum('bhtd,hdc->btc', y, p['wo']) + p['bo']
        h2 = _layernorm(x, p['ln2_g'], p['ln2_b'])
        x = x + jax.nn.relu(h2 @ p['w1'] + p['b1']) @ p['w2'] + p['b2']
    h = _layernorm(x, params['lnf_g'], params['lnf_b'])
    return h @ params['wl'] + params['bl']


if __name__ == "__main__":
    key = jax.random.PRNGKey(0)
    pkey, ikey, tkey = jax.random.split(key, 3)
    params = init_params(pkey)

    B, T = 2, BLOCK_SIZE
    idx = jax.random.randint(ikey, (B, T), 0, VOCAB_SIZE, dtype=jnp.int32)
    targets = jax.random.randint(tkey, (B, T), 0, VOCAB_SIZE, dtype=jnp.int32)

    # path 1: targets=None (PyTorch default forward)
    logits, loss = bigram_forward(idx, params, targets=None)
    logits = jax.block_until_ready(logits)
    assert logits.shape == (B, T, VOCAB_SIZE), logits.shape
    assert loss is None

    ref_logits = reference_forward(idx, params)
    err = float(jnp.max(jnp.abs(logits - ref_logits)))
    assert jnp.allclose(logits, ref_logits, atol=1e-3, rtol=1e-3), err

    # path 2: targets given -> fused cross-entropy
    logits2, loss2 = bigram_forward(idx, params, targets=targets)
    loss2 = jax.block_until_ready(loss2)
    ref_logp = jax.nn.log_softmax(ref_logits.reshape(-1, VOCAB_SIZE), axis=-1)
    ref_loss = -jnp.mean(jnp.take_along_axis(ref_logp, targets.reshape(-1, 1), axis=-1))
    assert jnp.allclose(logits2, ref_logits, atol=1e-3, rtol=1e-3)
    assert jnp.allclose(loss2, ref_loss, atol=1e-3, rtol=1e-3), (float(loss2), float(ref_loss))

    print("KERNEL_OK")
</pallas_src>

<mosaic_0001>
module attributes {stable_mosaic.version = 11 : i64} {
  func.func @kernel(%arg0: i32, %arg1: memref<16x128xf32, #tpu.memory_space<vmem>>, %arg2: memref<648x32xf32, #tpu.memory_space<vmem>>, %arg3: memref<120x128xf32, #tpu.memory_space<vmem>>, %arg4: memref<16x128xf32, #tpu.memory_space<vmem>>) attributes {dimension_semantics = [#tpu.dimension_semantics<arbitrary>], iteration_bounds = array<i64: 1>, scalar_prefetch = 0 : i64, scratch_operands = 0 : i64, tpu.core_type = #tpu.core_type<tc>, window_params = [{transform_indices = @transform_0, window_bounds = array<i64: 16, 128>}, {pipeline_mode = #tpu.pipeline_mode<synchronous>, transform_indices = @transform_1, window_bounds = array<i64: 648, 32>}, {pipeline_mode = #tpu.pipeline_mode<synchronous>, transform_indices = @transform_2, window_bounds = array<i64: 120, 128>}, {transform_indices = @transform_3, window_bounds = array<i64: 16, 128>}]} {
    %c0 = arith.constant 0 : index
    %c0_0 = arith.constant 0 : index
    %0 = vector.load %arg2[%c0, %c0_0] : memref<648x32xf32, #tpu.memory_space<vmem>>, vector<128x32xf32>
    %c0_1 = arith.constant 0 : index
    %c0_2 = arith.constant 0 : index
    %1 = vector.load %arg1[%c0_1, %c0_2] : memref<16x128xf32, #tpu.memory_space<vmem>>, vector<16x128xf32>
    %cst = arith.constant dense<0.000000e+00> : vector<16x32xf32>
    %2 = tpu.matmul %1, %0, %cst {dimension_numbers = #tpu.dot_dimension_numbers<[1], [0], [0], [1], [0, 0, 1, 1], [], []>} : vector<16x128xf32>, vector<128x32xf32>, vector<16x32xf32> -> vector<16x32xf32>
    %c128 = arith.constant 128 : index
    %c0_3 = arith.constant 0 : index
    %3 = vector.load %arg2[%c128, %c0_3] : memref<648x32xf32, #tpu.memory_space<vmem>>, vector<8x32xf32>
    %4 = tpu.concatenate %3, %3 in 0 : vector<8x32xf32>, vector<8x32xf32> -> vector<16x32xf32>
    %5 = arith.addf %2, %4 : vector<16x32xf32>
    %6 = tpu.iota {dimensions = array<i32: 0>} : vector<16x16xi32>
    %7 = tpu.iota {dimensions = array<i32: 1>} : vector<16x16xi32>
    %8 = arith.cmpi sle, %7, %6 : vector<16x16xi32>
    %c3_i32 = arith.constant 3 : i32
    %9 = vector.broadcast %c3_i32 : i32 to vector<16x16xi32>
    %10 = arith.shrsi %6, %9 : vector<16x16xi32>
    %c3_i32_4 = arith.constant 3 : i32
    %11 = vector.broadcast %c3_i32_4 : i32 to vector<16x16xi32>
    %12 = arith.shrsi %7, %11 : vector<16x16xi32>
    %13 = arith.cmpi eq, %10, %12 : vector<16x16xi32>
    %14 = arith.andi %8, %13 : vector<16x16xi1>
    %cst_5 = arith.constant 0.000000e+00 : f32
    %cst_6 = arith.constant -1.000000e+30 : f32
    %15 = vector.broadcast %cst_5 : f32 to vector<16x16xf32>
    %16 = vector.broadcast %cst_6 : f32 to vector<16x16xf32>
    %17 = arith.select %14, %15, %16 : vector<16x16xi1>, vector<16x16xf32>
    %18 = tpu.iota {dimensions = array<i32: 1>} : vector<1x32xi32>
    %c0_i32 = arith.constant 0 : i32
    %19 = vector.broadcast %c0_i32 : i32 to vector<1x32xi32>
    %20 = arith.cmpi sge, %18, %19 : vector<1x32xi32>
    %c8_i32 = arith.constant 8 : i32
    %21 = vector.broadcast %c8_i32 : i32 to vector<1x32xi32>
    %22 = arith.cmpi slt, %18, %21 : vector<1x32xi32>
    %23 = arith.andi %20, %22 : vector<1x32xi1>
    %24 = arith.extui %23 : vector<1x32xi1> to vector<1x32xi32>
    %25 = arith.sitofp %24 : vector<1x32xi32> to vector<1x32xf32>
    %c8_i32_7 = arith.constant 8 : i32
    %26 = vector.broadcast %c8_i32_7 : i32 to vector<1x32xi32>
    %27 = arith.cmpi sge, %18, %26 : vector<1x32xi32>
    %c16_i32 = arith.constant 16 : i32
    %28 = vector.broadcast %c16_i32 : i32 to vector<1x32xi32>
    %29 = arith.cmpi slt, %18, %28 : vector<1x32xi32>
    %30 = arith.andi %27, %29 : vector<1x32xi1>
    %31 = arith.extui %30 : vector<1x32xi1> to vector<1x32xi32>
    %32 = arith.sitofp %31 : vector<1x32xi32> to vector<1x32xf32>
    %c16_i32_8 = arith.constant 16 : i32
    %33 = vector.broadcast %c16_i32_8 : i32 to vector<1x32xi32>
    %34 = arith.cmpi sge, %18, %33 : vector<1x32xi32>
    %c24_i32 = arith.constant 24 : i32
    %35 = vector.broadcast %c24_i32 : i32 to vector<1x32xi32>
    %36 = arith.cmpi slt, %18, %35 : vector<1x32xi32>
    %37 = arith.andi %34, %36 : vector<1x32xi1>
    %38 = arith.extui %37 : vector<1x32xi1> to vector<1x32xi32>
    %39 = arith.sitofp %38 : vector<1x32xi32> to vector<1x32xf32>
    %c24_i32_9 = arith.constant 24 : i32
    %40 = vector.broadcast %c24_i32_9 : i32 to vector<1x32xi32>
    %41 = arith.cmpi sge, %18, %40 : vector<1x32xi32>
    %c32_i32 = arith.constant 32 : i32
    %42 = vector.broadcast %c32_i32 : i32 to vector<1x32xi32>
    %43 = arith.cmpi slt, %18, %42 : vector<1x32xi32>
    %44 = arith.andi %41, %43 : vector<1x32xi1>
    %45 = arith.extui %44 : vector<1x32xi1> to vector<1x32xi32>
    %46 = arith.sitofp %45 : vector<1x32xi32> to vector<1x32xf32>
    %c136 = arith.constant 136 : index
    %c0_10 = arith.constant 0 : index
    %47 = vector.load %arg2[%c136, %c0_10] : memref<648x32xf32, #tpu.memory_space<vmem>>, vector<32x32xf32>
    %c168 = arith.constant 168 : index
    %c0_11 = arith.constant 0 : index
    %48 = vector.load %arg2[%c168, %c0_11] : memref<648x32xf32, #tpu.memory_space<vmem>>, vector<32x32xf32>
    %c200 = arith.constant 200 : index
    %c0_12 = arith.constant 0 : index
    %49 = vector.load %arg2[%c200, %c0_12] : memref<648x32xf32, #tpu.memory_space<vmem>>, vector<32x32xf32>
    %c232 = arith.constant 232 : index
    %c0_13 = arith.constant 0 : index
    %50 = vector.load %arg2[%c232, %c0_13] : memref<648x32xf32, #tpu.memory_space<vmem>>, vector<32x32xf32>
    %c264 = arith.constant 264 : index
    %c0_14 = arith.constant 0 : index
    %51 = vector.load %arg2[%c264, %c0_14] : memref<648x32xf32, #tpu.memory_space<vmem>>, vector<128x32xf32>
    %c0_15 = arith.constant 0 : index
    %c0_16 = arith.constant 0 : index
    %52 = vector.load %arg3[%c0_15, %c0_16] : memref<120x128xf32, #tpu.memory_space<vmem>>, vector<32x128xf32>
    %c96 = arith.constant 96 : index
    %c0_17 = arith.constant 0 : index
    %53 = vector.load %arg3[%c96, %c0_17] : memref<120x128xf32, #tpu.memory_space<vmem>>, vector<8x128xf32>
    %54 = vector.extract_strided_slice %53 {offsets = [0, 0], sizes = [1, 32], strides = [1, 1]} : vector<8x128xf32> to vector<1x32xf32>
    %55 = vector.extract_strided_slice %53 {offsets = [1, 0], sizes = [1, 32], strides = [1, 1]} : vector<8x128xf32> to vector<1x32xf32>
    %56 = vector.extract_strided_slice %53 {offsets = [2, 0], sizes = [1, 32], strides = [1, 1]} : vector<8x128xf32> to vector<1x32xf32>
    %57 = vector.extract_strided_slice %53 {offsets = [3, 0], sizes = [1, 32], strides = [1, 1]} : vector<8x128xf32> to vector<1x32xf32>
    %58 = vector.extract_strided_slice %53 {offsets = [4, 0], sizes = [1, 32], strides = [1, 1]} : vector<8x128xf32> to vector<1x32xf32>
    %59 = vector.extract_strided_slice %53 {offsets = [5, 0], sizes = [1, 128], strides = [1, 1]} : vector<8x128xf32> to vector<1x128xf32>
    %60 = vector.extract_strided_slice %53 {offsets = [6, 0], sizes = [1, 32], strides = [1, 1]} : vector<8x128xf32> to vector<1x32xf32>
    %cst_18 = arith.constant dense<0.000000e+00> : vector<16xf32>
    %61 = vector.multi_reduction <add>, %5, %cst_18 [1] : vector<16x32xf32> to vector<16xf32>
    %62 = vector.shape_cast %61 : vector<16xf32> to vector<16x1xf32>
    %cst_19 = arith.constant 3.200000e+01 : f32
    %63 = vector.broadcast %cst_19 : f32 to vector<16x1xf32>
    %64 = arith.divf %62, %63 : vector<16x1xf32>
    %65 = vector.broadcast %64 : vector<16x1xf32> to vector<16x32xf32>
    %66 = arith.subf %5, %65 : vector<16x32xf32>
    %67 = arith.mulf %66, %66 : vector<16x32xf32>
    %cst_20 = arith.constant dense<0.000000e+00> : vector<16xf32>
    %68 = vector.multi_reduction <add>, %67, %cst_20 [1] : vector<16x32xf32> to vector<16xf32>
    %69 = vector.shape_cast %68 : vector<16xf32> to vector<16x1xf32>
    %cst_21 = arith.constant 3.200000e+01 : f32
    %70 = vector.broadcast %cst_21 : f32 to vector<16x1xf32>
    %71 = arith.divf %69, %70 : vector<16x1xf32>
    %72 = vector.broadcast %64 : vector<16x1xf32> to vector<16x32xf32>
    %73 = arith.subf %5, %72 : vector<16x32xf32>
    %cst_22 = arith.constant 9.99999974E-6 : f32
    %74 = vector.broadcast %cst_22 : f32 to vector<16x1xf32>
    %75 = arith.addf %71, %74 : vector<16x1xf32>
    %76 = math.rsqrt %75 : vector<16x1xf32>
    %77 = vector.broadcast %76 : vector<16x1xf32> to vector<16x32xf32>
    %78 = arith.mulf %73, %77 : vector<16x32xf32>
    %79 = vector.broadcast %54 : vector<1x32xf32> to vector<16x32xf32>
    %80 = arith.mulf %78, %79 : vector<16x32xf32>
    %81 = vector.broadcast %55 : vector<1x32xf32> to vector<16x32xf32>
    %82 = arith.addf %80, %81 : vector<16x32xf32>
    %cst_23 = arith.constant dense<0.000000e+00> : vector<16x32xf32>
    %83 = tpu.matmul %82, %47, %cst_23 {dimension_numbers = #tpu.dot_dimension_numbers<[1], [0], [0], [1], [0, 0, 1, 1], [], []>} : vector<16x32xf32>, vector<32x32xf32>, vector<16x32xf32> -> vector<16x32xf32>
    %cst_24 = arith.constant dense<0.000000e+00> : vector<16x32xf32>
    %84 = tpu.matmul %82, %48, %cst_24 {dimension_numbers = #tpu.dot_dimension_numbers<[1], [0], [0], [1], [0, 0, 1, 1], [], []>} : vector<16x32xf32>, vector<32x32xf32>, vector<16x32xf32> -> vector<16x32xf32>
    %cst_25 = arith.constant dense<0.000000e+00> : vector<16x32xf32>
    %85 = tpu.matmul %82, %49, %cst_25 {dimension_numbers = #tpu.dot_dimension_numbers<[1], [0], [0], [1], [0, 0, 1, 1], [], []>} : vector<16x32xf32>, vector<32x32xf32>, vector<16x32xf32> -> vector<16x32xf32>
    %cst_26 = arith.constant 0.000000e+00 : f32
    %86 = vector.broadcast %cst_26 : f32 to vector<16x32xf32>
    %87 = vector.broadcast %25 : vector<1x32xf32> to vector<16x32xf32>
    %88 = arith.mulf %84, %87 : vector<16x32xf32>
    %cst_27 = arith.constant dense<0.000000e+00> : vector<16x16xf32>
    %89 = tpu.matmul %83, %88, %cst_27 {dimension_numbers = #tpu.dot_dimension_numbers<[1], [1], [0], [0], [0, 0, 1, 0], [], []>} : vector<16x32xf32>, vector<16x32xf32>, vector<16x16xf32> -> vector<16x16xf32>
    %90 = arith.addf %89, %17 : vector<16x16xf32>
    %cst_28 = arith.constant dense<0xFF800000> : vector<16xf32>
    %91 = vector.multi_reduction <maximumf>, %90, %cst_28 [1] : vector<16x16xf32> to vector<16xf32>
    %92 = vector.shape_cast %91 : vector<16xf32> to vector<16x1xf32>
    %93 = vector.broadcast %92 : vector<16x1xf32> to vector<16x16xf32>
    %94 = arith.subf %90, %93 : vector<16x16xf32>
    %95 = math.exp %94 : vector<16x16xf32>
    %cst_29 = arith.constant dense<0.000000e+00> : vector<16xf32>
    %96 = vector.multi_reduction <add>, %95, %cst_29 [1] : vector<16x16xf32> to vector<16xf32>
    %97 = vector.shape_cast %96 : vector<16xf32> to vector<16x1xf32>
    %98 = vector.broadcast %97 : vector<16x1xf32> to vector<16x16xf32>
    %99 = arith.divf %95, %98 : vector<16x16xf32>
    %100 = vector.broadcast %25 : vector<1x32xf32> to vector<16x32xf32>
    %101 = arith.mulf %85, %100 : vector<16x32xf32>
    %cst_30 = arith.constant dense<0.000000e+00> : vector<16x32xf32>
    %102 = tpu.matmul %99, %101, %cst_30 {dimension_numbers = #tpu.dot_dimension_numbers<[1], [0], [0], [1], [0, 0, 1, 1], [], []>} : vector<16x16xf32>, vector<16x32xf32>, vector<16x32xf32> -> vector<16x32xf32>
    %103 = arith.addf %86, %102 : vector<16x32xf32>
    %104 = vector.broadcast %32 : vector<1x32xf32> to vector<16x32xf32>
    %105 = arith.mulf %84, %104 : vector<16x32xf32>
    %cst_31 = arith.constant dense<0.000000e+00> : vector<16x16xf32>
    %106 = tpu.matmul %83, %105, %cst_31 {dimension_numbers = #tpu.dot_dimension_numbers<[1], [1], [0], [0], [0, 0, 1, 0], [], []>} : vector<16x32xf32>, vector<16x32xf32>, vector<16x16xf32> -> vector<16x16xf32>
    %107 = arith.addf %106, %17 : vector<16x16xf32>
    %cst_32 = arith.constant dense<0xFF800000> : vector<16xf32>
    %108 = vector.multi_reduction <maximumf>, %107, %cst_32 [1] : vector<16x16xf32> to vector<16xf32>
    %109 = vector.shape_cast %108 : vector<16xf32> to vector<16x1xf32>
    %110 = vector.broadcast %109 : vector<16x1xf32> to vector<16x16xf32>
    %111 = arith.subf %107, %110 : vector<16x16xf32>
    %112 = math.exp %111 : vector<16x16xf32>
    %cst_33 = arith.constant dense<0.000000e+00> : vector<16xf32>
    %113 = vector.multi_reduction <add>, %112, %cst_33 [1] : vector<16x16xf32> to vector<16xf32>
    %114 = vector.shape_cast %113 : vector<16xf32> to vector<16x1xf32>
    %115 = vector.broadcast %114 : vector<16x1xf32> to vector<16x16xf32>
    %116 = arith.divf %112, %115 : vector<16x16xf32>
    %117 = vector.broadcast %32 : vector<1x32xf32> to vector<16x32xf32>
    %118 = arith.mulf %85, %117 : vector<16x32xf32>
    %cst_34 = arith.constant dense<0.000000e+00> : vector<16x32xf32>
    %119 = tpu.matmul %116, %118, %cst_34 {dimension_numbers = #tpu.dot_dimension_numbers<[1], [0], [0], [1], [0, 0, 1, 1], [], []>} : vector<16x16xf32>, vector<16x32xf32>, vector<16x32xf32> -> vector<16x32xf32>
    %120 = arith.addf %103, %119 : vector<16x32xf32>
    %121 = vector.broadcast %39 : vector<1x32xf32> to vector<16x32xf32>
    %122 = arith.mulf %84, %121 : vector<16x32xf32>
    %cst_35 = arith.constant dense<0.000000e+00> : vector<16x16xf32>
    %123 = tpu.matmul %83, %122, %cst_35 {dimension_numbers = #tpu.dot_dimension_numbers<[1], [1], [0], [0], [0, 0, 1, 0], [], []>} : vector<16x32xf32>, vector<16x32xf32>, vector<16x16xf32> -> vector<16x16xf32>
    %124 = arith.addf %123, %17 : vector<16x16xf32>
    %cst_36 = arith.constant dense<0xFF800000> : vector<16xf32>
    %125 = vector.multi_reduction <maximumf>, %124, %cst_36 [1] : vector<16x16xf32> to vector<16xf32>
    %126 = vector.shape_cast %125 : vector<16xf32> to vector<16x1xf32>
    %127 = vector.broadcast %126 : vector<16x1xf32> to vector<16x16xf32>
    %128 = arith.subf %124, %127 : vector<16x16xf32>
    %129 = math.exp %128 : vector<16x16xf32>
    %cst_37 = arith.constant dense<0.000000e+00> : vector<16xf32>
    %130 = vector.multi_reduction <add>, %129, %cst_37 [1] : vector<16x16xf32> to vector<16xf32>
    %131 = vector.shape_cast %130 : vector<16xf32> to vector<16x1xf32>
    %132 = vector.broadcast %131 : vector<16x1xf32> to vector<16x16xf32>
    %133 = arith.divf %129, %132 : vector<16x16xf32>
    %134 = vector.broadcast %39 : vector<1x32xf32> to vector<16x32xf32>
    %135 = arith.mulf %85, %134 : vector<16x32xf32>
    %cst_38 = arith.constant dense<0.000000e+00> : vector<16x32xf32>
    %136 = tpu.matmul %133, %135, %cst_38 {dimension_numbers = #tpu.dot_dimension_numbers<[1], [0], [0], [1], [0, 0, 1, 1], [], []>} : vector<16x16xf32>, vector<16x32xf32>, vector<16x32xf32> -> vector<16x32xf32>
    %137 = arith.addf %120, %136 : vector<16x32xf32>
    %138 = vector.broadcast %46 : vector<1x32xf32> to vector<16x32xf32>
    %139 = arith.mulf %84, %138 : vector<16x32xf32>
    %cst_39 = arith.constant dense<0.000000e+00> : vector<16x16xf32>
    %140 = tpu.matmul %83, %139, %cst_39 {dimension_numbers = #tpu.dot_dimension_numbers<[1], [1], [0], [0], [0, 0, 1, 0], [], []>} : vector<16x32xf32>, vector<16x32xf32>, vector<16x16xf32> -> vector<16x16xf32>
    %141 = arith.addf %140, %17 : vector<16x16xf32>
    %cst_40 = arith.constant dense<0xFF800000> : vector<16xf32>
    %142 = vector.multi_reduction <maximumf>, %141, %cst_40 [1] : vector<16x16xf32> to vector<16xf32>
    %143 = vector.shape_cast %142 : vector<16xf32> to vector<16x1xf32>
    %144 = vector.broadcast %143 : vector<16x1xf32> to vector<16x16xf32>
    %145 = arith.subf %141, %144 : vector<16x16xf32>
    %146 = math.exp %145 : vector<16x16xf32>
    %cst_41 = arith.constant dense<0.000000e+00> : vector<16xf32>
    %147 = vector.multi_reduction <add>, %146, %cst_41 [1] : vector<16x16xf32> to vector<16xf32>
    %148 = vector.shape_cast %147 : vector<16xf32> to vector<16x1xf32>
    %149 = vector.broadcast %148 : vector<16x1xf32> to vector<16x16xf32>
    %150 = arith.divf %146, %149 : vector<16x16xf32>
    %151 = vector.broadcast %46 : vector<1x32xf32> to vector<16x32xf32>
    %152 = arith.mulf %85, %151 : vector<16x32xf32>
    %cst_42 = arith.constant dense<0.000000e+00> : vector<16x32xf32>
    %153 = tpu.matmul %150, %152, %cst_42 {dimension_numbers = #tpu.dot_dimension_numbers<[1], [0], [0], [1], [0, 0, 1, 1], [], []>} : vector<16x16xf32>, vector<16x32xf32>, vector<16x32xf32> -> vector<16x32xf32>
    %154 = arith.addf %137, %153 : vector<16x32xf32>
    %cst_43 = arith.constant dense<0.000000e+00> : vector<16x32xf32>
    %155 = tpu.matmul %154, %50, %cst_43 {dimension_numbers = #tpu.dot_dimension_numbers<[1], [0], [0], [1], [0, 0, 1, 1], [], []>} : vector<16x32xf32>, vector<32x32xf32>, vector<16x32xf32> -> vector<16x32xf32>
    %156 = arith.addf %5, %155 : vector<16x32xf32>
    %157 = vector.broadcast %56 : vector<1x32xf32> to vector<16x32xf32>
    %158 = arith.addf %156, %157 : vector<16x32xf32>
    %cst_44 = arith.constant dense<0.000000e+00> : vector<16xf32>
    %159 = vector.multi_reduction <add>, %158, %cst_44 [1] : vector<16x32xf32> to vector<16xf32>
    %160 = vector.shape_cast %159 : vector<16xf32> to vector<16x1xf32>
    %cst_45 = arith.constant 3.200000e+01 : f32
    %161 = vector.broadcast %cst_45 : f32 to vector<16x1xf32>
    %162 = arith.divf %160, %161 : vector<16x1xf32>
    %163 = vector.broadcast %162 : vector<16x1xf32> to vector<16x32xf32>
    %164 = arith.subf %158, %163 : vector<16x32xf32>
    %165 = arith.mulf %164, %164 : vector<16x32xf32>
    %cst_46 = arith.constant dense<0.000000e+00> : vector<16xf32>
    %166 = vector.multi_reduction <add>, %165, %cst_46 [1] : vector<16x32xf32> to vector<16xf32>
    %167 = vector.shape_cast %166 : vector<16xf32> to vector<16x1xf32>
    %cst_47 = arith.constant 3.200000e+01 : f32
    %168 = vector.broadcast %cst_47 : f32 to vector<16x1xf32>
    %169 = arith.divf %167, %168 : vector<16x1xf32>
    %170 = vector.broadcast %162 : vector<16x1xf32> to vector<16x32xf32>
    %171 = arith.subf %158, %170 : vector<16x32xf32>
    %cst_48 = arith.constant 9.99999974E-6 : f32
    %172 = vector.broadcast %cst_48 : f32 to vector<16x1xf32>
    %173 = arith.addf %169, %172 : vector<16x1xf32>
    %174 = math.rsqrt %173 : vector<16x1xf32>
    %175 = vector.broadcast %174 : vector<16x1xf32> to vector<16x32xf32>
    %176 = arith.mulf %171, %175 : vector<16x32xf32>
    %177 = vector.broadcast %57 : vector<1x32xf32> to vector<16x32xf32>
    %178 = arith.mulf %176, %177 : vector<16x32xf32>
    %179 = vector.broadcast %58 : vector<1x32xf32> to vector<16x32xf32>
    %180 = arith.addf %178, %179 : vector<16x32xf32>
    %cst_49 = arith.constant dense<0.000000e+00> : vector<16x128xf32>
    %181 = tpu.matmul %180, %52, %cst_49 {dimension_numbers = #tpu.dot_dimension_numbers<[1], [0], [0], [1], [0, 0, 1, 1], [], []>} : vector<16x32xf32>, vector<32x128xf32>, vector<16x128xf32> -> vector<16x128xf32>
    %182 = vector.broadcast %59 : vector<1x128xf32> to vector<16x128xf32>
    %183 = arith.addf %181, %182 : vector<16x128xf32>
    %cst_50 = arith.constant 0.000000e+00 : f32
    %184 = vector.broadcast %cst_50 : f32 to vector<16x128xf32>
    %185 = arith.maximumf %183, %184 : vector<16x128xf32>
    %cst_51 = arith.constant dense<0.000000e+00> : vector<16x32xf32>
    %186 = tpu.matmul %185, %51, %cst_51 {dimension_numbers = #tpu.dot_dimension_numbers<[1], [0], [0], [1], [0, 0, 1, 1], [], []>} : vector<16x128xf32>, vector<128x32xf32>, vector<16x32xf32> -> vector<16x32xf32>
    %187 = arith.addf %158, %186 : vector<16x32xf32>
    %188 = vector.broadcast %60 : vector<1x32xf32> to vector<16x32xf32>
    %189 = arith.addf %187, %188 : vector<16x32xf32>
    %c392 = arith.constant 392 : index
    %c0_52 = arith.constant 0 : index
    %190 = vector.load %arg2[%c392, %c0_52] : memref<648x32xf32, #tpu.memory_space<vmem>>, vector<32x32xf32>
    %c424 = arith.constant 424 : index
    %c0_53 = arith.constant 0 : index
    %191 = vector.load %arg2[%c424, %c0_53] : memref<648x32xf32, #tpu.memory_space<vmem>>, vector<32x32xf32>
    %c456 = arith.constant 456 : index
    %c0_54 = arith.constant 0 : index
    %192 = vector.load %arg2[%c456, %c0_54] : memref<648x32xf32, #tpu.memory_space<vmem>>, vector<32x32xf32>
    %c488 = arith.constant 488 : index
    %c0_55 = arith.constant 0 : index
    %193 = vector.load %arg2[%c488, %c0_55] : memref<648x32xf32, #tpu.memory_space<vmem>>, vector<32x32xf32>
    %c520 = arith.constant 520 : index
    %c0_56 = arith.constant 0 : index
    %194 = vector.load %arg2[%c520, %c0_56] : memref<648x32xf32, #tpu.memory_space<vmem>>, vector<128x32xf32>
    %c32 = arith.constant 32 : index
    %c0_57 = arith.constant 0 : index
    %195 = vector.load %arg3[%c32, %c0_57] : memref<120x128xf32, #tpu.memory_space<vmem>>, vector<32x128xf32>
    %c104 = arith.constant 104 : index
    %c0_58 = arith.constant 0 : index
    %196 = vector.load %arg3[%c104, %c0_58] : memref<120x128xf32, #tpu.memory_space<vmem>>, vector<8x128xf32>
    %197 = vector.extract_strided_slice %196 {offsets = [0, 0], sizes = [1, 32], strides = [1, 1]} : vector<8x128xf32> to vector<1x32xf32>
    %198 = vector.extract_strided_slice %196 {offsets = [1, 0], sizes = [1, 32], strides = [1, 1]} : vector<8x128xf32> to vector<1x32xf32>
    %199 = vector.extract_strided_slice %196 {offsets = [2, 0], sizes = [1, 32], strides = [1, 1]} : vector<8x128xf32> to vector<1x32xf32>
    %200 = vector.extract_strided_slice %196 {offsets = [3, 0], sizes = [1, 32], strides = [1, 1]} : vector<8x128xf32> to vector<1x32xf32>
    %201 = vector.extract_strided_slice %196 {offsets = [4, 0], sizes = [1, 32], strides = [1, 1]} : vector<8x128xf32> to vector<1x32xf32>
    %202 = vector.extract_strided_slice %196 {offsets = [5, 0], sizes = [1, 128], strides = [1, 1]} : vector<8x128xf32> to vector<1x128xf32>
    %203 = vector.extract_strided_slice %196 {offsets = [6, 0], sizes = [1, 32], strides = [1, 1]} : vector<8x128xf32> to vector<1x32xf32>
    %cst_59 = arith.constant dense<0.000000e+00> : vector<16xf32>
    %204 = vector.multi_reduction <add>, %189, %cst_59 [1] : vector<16x32xf32> to vector<16xf32>
    %205 = vector.shape_cast %204 : vector<16xf32> to vector<16x1xf32>
    %cst_60 = arith.constant 3.200000e+01 : f32
    %206 = vector.broadcast %cst_60 : f32 to vector<16x1xf32>
    %207 = arith.divf %205, %206 : vector<16x1xf32>
    %208 = vector.broadcast %207 : vector<16x1xf32> to vector<16x32xf32>
    %209 = arith.subf %189, %208 : vector<16x32xf32>
    %210 = arith.mulf %209, %209 : vector<16x32xf32>
    %cst_61 = arith.constant dense<0.000000e+00> : vector<16xf32>
    %211 = vector.multi_reduction <add>, %210, %cst_61 [1] : vector<16x32xf32> to vector<16xf32>
    %212 = vector.shape_cast %211 : vector<16xf32> to vector<16x1xf32>
    %cst_62 = arith.constant 3.200000e+01 : f32
    %213 = vector.broadcast %cst_62 : f32 to vector<16x1xf32>
    %214 = arith.divf %212, %213 : vector<16x1xf32>
    %215 = vector.broadcast %207 : vector<16x1xf32> to vector<16x32xf32>
    %216 = arith.subf %189, %215 : vector<16x32xf32>
    %cst_63 = arith.constant 9.99999974E-6 : f32
    %217 = vector.broadcast %cst_63 : f32 to vector<16x1xf32>
    %218 = arith.addf %214, %217 : vector<16x1xf32>
    %219 = math.rsqrt %218 : vector<16x1xf32>
    %220 = vector.broadcast %219 : vector<16x1xf32> to vector<16x32xf32>
    %221 = arith.mulf %216, %220 : vector<16x32xf32>
    %222 = vector.broadcast %197 : vector<1x32xf32> to vector<16x32xf32>
    %223 = arith.mulf %221, %222 : vector<16x32xf32>
    %224 = vector.broadcast %198 : vector<1x32xf32> to vector<16x32xf32>
    %225 = arith.addf %223, %224 : vector<16x32xf32>
    %cst_64 = arith.constant dense<0.000000e+00> : vector<16x32xf32>
    %226 = tpu.matmul %225, %190, %cst_64 {dimension_numbers = #tpu.dot_dimension_numbers<[1], [0], [0], [1], [0, 0, 1, 1], [], []>} : vector<16x32xf32>, vector<32x32xf32>, vector<16x32xf32> -> vector<16x32xf32>
    %cst_65 = arith.constant dense<0.000000e+00> : vector<16x32xf32>
    %227 = tpu.matmul %225, %191, %cst_65 {dimension_numbers = #tpu.dot_dimension_numbers<[1], [0], [0], [1], [0, 0, 1, 1], [], []>} : vector<16x32xf32>, vector<32x32xf32>, vector<16x32xf32> -> vector<16x32xf32>
    %cst_66 = arith.constant dense<0.000000e+00> : vector<16x32xf32>
    %228 = tpu.matmul %225, %192, %cst_66 {dimension_numbers = #tpu.dot_dimension_numbers<[1], [0], [0], [1], [0, 0, 1, 1], [], []>} : vector<16x32xf32>, vector<32x32xf32>, vector<16x32xf32> -> vector<16x32xf32>
    %cst_67 = arith.constant 0.000000e+00 : f32
    %229 = vector.broadcast %cst_67 : f32 to vector<16x32xf32>
    %230 = vector.broadcast %25 : vector<1x32xf32> to vector<16x32xf32>
    %231 = arith.mulf %227, %230 : vector<16x32xf32>
    %cst_68 = arith.constant dense<0.000000e+00> : vector<16x16xf32>
    %232 = tpu.matmul %226, %231, %cst_68 {dimension_numbers = #tpu.dot_dimension_numbers<[1], [1], [0], [0], [0, 0, 1, 0], [], []>} : vector<16x32xf32>, vector<16x32xf32>, vector<16x16xf32> -> vector<16x16xf32>
    %233 = arith.addf %232, %17 : vector<16x16xf32>
    %cst_69 = arith.constant dense<0xFF800000> : vector<16xf32>
    %234 = vector.multi_reduction <maximumf>, %233, %cst_69 [1] : vector<16x16xf32> to vector<16xf32>
    %235 = vector.shape_cast %234 : vector<16xf32> to vector<16x1xf32>
    %236 = vector.broadcast %235 : vector<16x1xf32> to vector<16x16xf32>
    %237 = arith.subf %233, %236 : vector<16x16xf32>
    %238 = math.exp %237 : vector<16x16xf32>
    %cst_70 = arith.constant dense<0.000000e+00> : vector<16xf32>
    %239 = vector.multi_reduction <add>, %238, %cst_70 [1] : vector<16x16xf32> to vector<16xf32>
    %240 = vector.shape_cast %239 : vector<16xf32> to vector<16x1xf32>
    %241 = vector.broadcast %240 : vector<16x1xf32> to vector<16x16xf32>
    %242 = arith.divf %238, %241 : vector<16x16xf32>
    %243 = vector.broadcast %25 : vector<1x32xf32> to vector<16x32xf32>
    %244 = arith.mulf %228, %243 : vector<16x32xf32>
    %cst_71 = arith.constant dense<0.000000e+00> : vector<16x32xf32>
    %245 = tpu.matmul %242, %244, %cst_71 {dimension_numbers = #tpu.dot_dimension_numbers<[1], [0], [0], [1], [0, 0, 1, 1], [], []>} : vector<16x16xf32>, vector<16x32xf32>, vector<16x32xf32> -> vector<16x32xf32>
    %246 = arith.addf %229, %245 : vector<16x32xf32>
    %247 = vector.broadcast %32 : vector<1x32xf32> to vector<16x32xf32>
    %248 = arith.mulf %227, %247 : vector<16x32xf32>
    %cst_72 = arith.constant dense<0.000000e+00> : vector<16x16xf32>
    %249 = tpu.matmul %226, %248, %cst_72 {dimension_numbers = #tpu.dot_dimension_numbers<[1], [1], [0], [0], [0, 0, 1, 0], [], []>} : vector<16x32xf32>, vector<16x32xf32>, vector<16x16xf32> -> vector<16x16xf32>
    %250 = arith.addf %249, %17 : vector<16x16xf32>
    %cst_73 = arith.constant dense<0xFF800000> : vector<16xf32>
    %251 = vector.multi_reduction <maximumf>, %250, %cst_73 [1] : vector<16x16xf32> to vector<16xf32>
    %252 = vector.shape_cast %251 : vector<16xf32> to vector<16x1xf32>
    %253 = vector.broadcast %252 : vector<16x1xf32> to vector<16x16xf32>
    %254 = arith.subf %250, %253 : vector<16x16xf32>
    %255 = math.exp %254 : vector<16x16xf32>
    %cst_74 = arith.constant dense<0.000000e+00> : vector<16xf32>
    %256 = vector.multi_reduction <add>, %255, %cst_74 [1] : vector<16x16xf32> to vector<16xf32>
    %257 = vector.shape_cast %256 : vector<16xf32> to vector<16x1xf32>
    %258 = vector.broadcast %257 : vector<16x1xf32> to vector<16x16xf32>
    %259 = arith.divf %255, %258 : vector<16x16xf32>
    %260 = vector.broadcast %32 : vector<1x32xf32> to vector<16x32xf32>
    %261 = arith.mulf %228, %260 : vector<16x32xf32>
    %cst_75 = arith.constant dense<0.000000e+00> : vector<16x32xf32>
    %262 = tpu.matmul %259, %261, %cst_75 {dimension_numbers = #tpu.dot_dimension_numbers<[1], [0], [0], [1], [0, 0, 1, 1], [], []>} : vector<16x16xf32>, vector<16x32xf32>, vector<16x32xf32> -> vector<16x32xf32>
    %263 = arith.addf %246, %262 : vector<16x32xf32>
    %264 = vector.broadcast %39 : vector<1x32xf32> to vector<16x32xf32>
    %265 = arith.mulf %227, %264 : vector<16x32xf32>
    %cst_76 = arith.constant dense<0.000000e+00> : vector<16x16xf32>
    %266 = tpu.matmul %226, %265, %cst_76 {dimension_numbers = #tpu.dot_dimension_numbers<[1], [1], [0], [0], [0, 0, 1, 0], [], []>} : vector<16x32xf32>, vector<16x32xf32>, vector<16x16xf32> -> vector<16x16xf32>
    %267 = arith.addf %266, %17 : vector<16x16xf32>
    %cst_77 = arith.constant dense<0xFF800000> : vector<16xf32>
    %268 = vector.multi_reduction <maximumf>, %267, %cst_77 [1] : vector<16x16xf32> to vector<16xf32>
    %269 = vector.shape_cast %268 : vector<16xf32> to vector<16x1xf32>
    %270 = vector.broadcast %269 : vector<16x1xf32> to vector<16x16xf32>
    %271 = arith.subf %267, %270 : vector<16x16xf32>
    %272 = math.exp %271 : vector<16x16xf32>
    %cst_78 = arith.constant dense<0.000000e+00> : vector<16xf32>
    %273 = vector.multi_reduction <add>, %272, %cst_78 [1] : vector<16x16xf32> to vector<16xf32>
    %274 = vector.shape_cast %273 : vector<16xf32> to vector<16x1xf32>
    %275 = vector.broadcast %274 : vector<16x1xf32> to vector<16x16xf32>
    %276 = arith.divf %272, %275 : vector<16x16xf32>
    %277 = vector.broadcast %39 : vector<1x32xf32> to vector<16x32xf32>
    %278 = arith.mulf %228, %277 : vector<16x32xf32>
    %cst_79 = arith.constant dense<0.000000e+00> : vector<16x32xf32>
    %279 = tpu.matmul %276, %278, %cst_79 {dimension_numbers = #tpu.dot_dimension_numbers<[1], [0], [0], [1], [0, 0, 1, 1], [], []>} : vector<16x16xf32>, vector<16x32xf32>, vector<16x32xf32> -> vector<16x32xf32>
    %280 = arith.addf %263, %279 : vector<16x32xf32>
    %281 = vector.broadcast %46 : vector<1x32xf32> to vector<16x32xf32>
    %282 = arith.mulf %227, %281 : vector<16x32xf32>
    %cst_80 = arith.constant dense<0.000000e+00> : vector<16x16xf32>
    %283 = tpu.matmul %226, %282, %cst_80 {dimension_numbers = #tpu.dot_dimension_numbers<[1], [1], [0], [0], [0, 0, 1, 0], [], []>} : vector<16x32xf32>, vector<16x32xf32>, vector<16x16xf32> -> vector<16x16xf32>
    %284 = arith.addf %283, %17 : vector<16x16xf32>
    %cst_81 = arith.constant dense<0xFF800000> : vector<16xf32>
    %285 = vector.multi_reduction <maximumf>, %284, %cst_81 [1] : vector<16x16xf32> to vector<16xf32>
    %286 = vector.shape_cast %285 : vector<16xf32> to vector<16x1xf32>
    %287 = vector.broadcast %286 : vector<16x1xf32> to vector<16x16xf32>
    %288 = arith.subf %284, %287 : vector<16x16xf32>
    %289 = math.exp %288 : vector<16x16xf32>
    %cst_82 = arith.constant dense<0.000000e+00> : vector<16xf32>
    %290 = vector.multi_reduction <add>, %289, %cst_82 [1] : vector<16x16xf32> to vector<16xf32>
    %291 = vector.shape_cast %290 : vector<16xf32> to vector<16x1xf32>
    %292 = vector.broadcast %291 : vector<16x1xf32> to vector<16x16xf32>
    %293 = arith.divf %289, %292 : vector<16x16xf32>
    %294 = vector.broadcast %46 : vector<1x32xf32> to vector<16x32xf32>
    %295 = arith.mulf %228, %294 : vector<16x32xf32>
    %cst_83 = arith.constant dense<0.000000e+00> : vector<16x32xf32>
    %296 = tpu.matmul %293, %295, %cst_83 {dimension_numbers = #tpu.dot_dimension_numbers<[1], [0], [0], [1], [0, 0, 1, 1], [], []>} : vector<16x16xf32>, vector<16x32xf32>, vector<16x32xf32> -> vector<16x32xf32>
    %297 = arith.addf %280, %296 : vector<16x32xf32>
    %cst_84 = arith.constant dense<0.000000e+00> : vector<16x32xf32>
    %298 = tpu.matmul %297, %193, %cst_84 {dimension_numbers = #tpu.dot_dimension_numbers<[1], [0], [0], [1], [0, 0, 1, 1], [], []>} : vector<16x32xf32>, vector<32x32xf32>, vector<16x32xf32> -> vector<16x32xf32>
    %299 = arith.addf %189, %298 : vector<16x32xf32>
    %300 = vector.broadcast %199 : vector<1x32xf32> to vector<16x32xf32>
    %301 = arith.addf %299, %300 : vector<16x32xf32>
    %cst_85 = arith.constant dense<0.000000e+00> : vector<16xf32>
    %302 = vector.multi_reduction <add>, %301, %cst_85 [1] : vector<16x32xf32> to vector<16xf32>
    %303 = vector.shape_cast %302 : vector<16xf32> to vector<16x1xf32>
    %cst_86 = arith.constant 3.200000e+01 : f32
    %304 = vector.broadcast %cst_86 : f32 to vector<16x1xf32>
    %305 = arith.divf %303, %304 : vector<16x1xf32>
    %306 = vector.broadcast %305 : vector<16x1xf32> to vector<16x32xf32>
    %307 = arith.subf %301, %306 : vector<16x32xf32>
    %308 = arith.mulf %307, %307 : vector<16x32xf32>
    %cst_87 = arith.constant dense<0.000000e+00> : vector<16xf32>
    %309 = vector.multi_reduction <add>, %308, %cst_87 [1] : vector<16x32xf32> to vector<16xf32>
    %310 = vector.shape_cast %309 : vector<16xf32> to vector<16x1xf32>
    %cst_88 = arith.constant 3.200000e+01 : f32
    %311 = vector.broadcast %cst_88 : f32 to vector<16x1xf32>
    %312 = arith.divf %310, %311 : vector<16x1xf32>
    %313 = vector.broadcast %305 : vector<16x1xf32> to vector<16x32xf32>
    %314 = arith.subf %301, %313 : vector<16x32xf32>
    %cst_89 = arith.constant 9.99999974E-6 : f32
    %315 = vector.broadcast %cst_89 : f32 to vector<16x1xf32>
    %316 = arith.addf %312, %315 : vector<16x1xf32>
    %317 = math.rsqrt %316 : vector<16x1xf32>
    %318 = vector.broadcast %317 : vector<16x1xf32> to vector<16x32xf32>
    %319 = arith.mulf %314, %318 : vector<16x32xf32>
    %320 = vector.broadcast %200 : vector<1x32xf32> to vector<16x32xf32>
    %321 = arith.mulf %319, %320 : vector<16x32xf32>
    %322 = vector.broadcast %201 : vector<1x32xf32> to vector<16x32xf32>
    %323 = arith.addf %321, %322 : vector<16x32xf32>
    %cst_90 = arith.constant dense<0.000000e+00> : vector<16x128xf32>
    %324 = tpu.matmul %323, %195, %cst_90 {dimension_numbers = #tpu.dot_dimension_numbers<[1], [0], [0], [1], [0, 0, 1, 1], [], []>} : vector<16x32xf32>, vector<32x128xf32>, vector<16x128xf32> -> vector<16x128xf32>
    %325 = vector.broadcast %202 : vector<1x128xf32> to vector<16x128xf32>
    %326 = arith.addf %324, %325 : vector<16x128xf32>
    %cst_91 = arith.constant 0.000000e+00 : f32
    %327 = vector.broadcast %cst_91 : f32 to vector<16x128xf32>
    %328 = arith.maximumf %326, %327 : vector<16x128xf32>
    %cst_92 = arith.constant dense<0.000000e+00> : vector<16x32xf32>
    %329 = tpu.matmul %328, %194, %cst_92 {dimension_numbers = #tpu.dot_dimension_numbers<[1], [0], [0], [1], [0, 0, 1, 1], [], []>} : vector<16x128xf32>, vector<128x32xf32>, vector<16x32xf32> -> vector<16x32xf32>
    %330 = arith.addf %301, %329 : vector<16x32xf32>
    %331 = vector.broadcast %203 : vector<1x32xf32> to vector<16x32xf32>
    %332 = arith.addf %330, %331 : vector<16x32xf32>
    %c112 = arith.constant 112 : index
    %c0_93 = arith.constant 0 : index
    %333 = vector.load %arg3[%c112, %c0_93] : memref<120x128xf32, #tpu.memory_space<vmem>>, vector<8x128xf32>
    %334 = vector.extract_strided_slice %333 {offsets = [0, 0], sizes = [1, 32], strides = [1, 1]} : vector<8x128xf32> to vector<1x32xf32>
    %335 = vector.extract_strided_slice %333 {offsets = [1, 0], sizes = [1, 32], strides = [1, 1]} : vector<8x128xf32> to vector<1x32xf32>
    %336 = vector.extract_strided_slice %333 {offsets = [2, 0], sizes = [1, 128], strides = [1, 1]} : vector<8x128xf32> to vector<1x128xf32>
    %c64 = arith.constant 64 : index
    %c0_94 = arith.constant 0 : index
    %337 = vector.load %arg3[%c64, %c0_94] : memref<120x128xf32, #tpu.memory_space<vmem>>, vector<32x128xf32>
    %cst_95 = arith.constant dense<0.000000e+00> : vector<16xf32>
    %338 = vector.multi_reduction <add>, %332, %cst_95 [1] : vector<16x32xf32> to vector<16xf32>
    %339 = vector.shape_cast %338 : vector<16xf32> to vector<16x1xf32>
    %cst_96 = arith.constant 3.200000e+01 : f32
    %340 = vector.broadcast %cst_96 : f32 to vector<16x1xf32>
    %341 = arith.divf %339, %340 : vector<16x1xf32>
    %342 = vector.broadcast %341 : vector<16x1xf32> to vector<16x32xf32>
    %343 = arith.subf %332, %342 : vector<16x32xf32>
    %344 = arith.mulf %343, %343 : vector<16x32xf32>
    %cst_97 = arith.constant dense<0.000000e+00> : vector<16xf32>
    %345 = vector.multi_reduction <add>, %344, %cst_97 [1] : vector<16x32xf32> to vector<16xf32>
    %346 = vector.shape_cast %345 : vector<16xf32> to vector<16x1xf32>
    %cst_98 = arith.constant 3.200000e+01 : f32
    %347 = vector.broadcast %cst_98 : f32 to vector<16x1xf32>
    %348 = arith.divf %346, %347 : vector<16x1xf32>
    %349 = vector.broadcast %341 : vector<16x1xf32> to vector<16x32xf32>
    %350 = arith.subf %332, %349 : vector<16x32xf32>
    %cst_99 = arith.constant 9.99999974E-6 : f32
    %351 = vector.broadcast %cst_99 : f32 to vector<16x1xf32>
    %352 = arith.addf %348, %351 : vector<16x1xf32>
    %353 = math.rsqrt %352 : vector<16x1xf32>
    %354 = vector.broadcast %353 : vector<16x1xf32> to vector<16x32xf32>
    %355 = arith.mulf %350, %354 : vector<16x32xf32>
    %356 = vector.broadcast %334 : vector<1x32xf32> to vector<16x32xf32>
    %357 = arith.mulf %355, %356 : vector<16x32xf32>
    %358 = vector.broadcast %335 : vector<1x32xf32> to vector<16x32xf32>
    %359 = arith.addf %357, %358 : vector<16x32xf32>
    %cst_100 = arith.constant dense<0.000000e+00> : vector<16x128xf32>
    %360 = tpu.matmul %359, %337, %cst_100 {dimension_numbers = #tpu.dot_dimension_numbers<[1], [0], [0], [1], [0, 0, 1, 1], [], []>} : vector<16x32xf32>, vector<32x128xf32>, vector<16x128xf32> -> vector<16x128xf32>
    %361 = vector.broadcast %336 : vector<1x128xf32> to vector<16x128xf32>
    %362 = arith.addf %360, %361 : vector<16x128xf32>
    %c0_101 = arith.constant 0 : index
    %c0_102 = arith.constant 0 : index
    %363 = vector.load %arg4[%c0_101, %c0_102] : memref<16x128xf32, #tpu.memory_space<vmem>>, vector<16x128xf32>
    tpu.vector_store %arg4[%c0_101, %c0_102], %362 {strides = array<i32>} : memref<16x128xf32, #tpu.memory_space<vmem>>, vector<16x128xf32>,
    return
  }
  func.func @transform_0(%arg0: i32) -> (i32, i32) {
    %c0_i32 = arith.constant 0 : i32
    %c0_i32_0 = arith.constant 0 : i32
    return %arg0, %c0_i32 : i32, i32
  }
  func.func @transform_1(%arg0: i32) -> (i32, i32) {
    %c0_i32 = arith.constant 0 : i32
    %c0_i32_0 = arith.constant 0 : i32
    %c0_i32_1 = arith.constant 0 : i32
    return %c0_i32, %c0_i32_0 : i32, i32
  }
  func.func @transform_2(%arg0: i32) -> (i32, i32) {
    %c0_i32 = arith.constant 0 : i32
    %c0_i32_0 = arith.constant 0 : i32
    %c0_i32_1 = arith.constant 0 : i32
    return %c0_i32, %c0_i32_0 : i32, i32
  }
  func.func @transform_3(%arg0: i32) -> (i32, i32) {
    %c0_i32 = arith.constant 0 : i32
    %c0_i32_0 = arith.constant 0 : i32
    return %arg0, %c0_i32 : i32, i32
  }
}

</mosaic_0001>

<bundles_post_ra>
// kernel: tpu_custom_call.1
= control target key start
LH: loop header
LB: loop body
LE: loop exit
PB: predicated region body
PF: predicated region fallthrough
CT: control target
= control target key end

     0   :  { %s4739_s0 = inlined_call_operand.vmem [shape: f32[16,128], index: 0, kind: input, shape index: {}]   ;;  %s4740_s1 = inlined_call_operand.vmem [shape: f32[648,32], index: 1, kind: input, shape index: {}]   ;;  %s4741_s2 = inlined_call_operand.vmem [shape: f32[120,128], index: 2, kind: input, shape index: {}]   ;;  %s4742_s3 = inlined_call_operand.hbm [shape: f32[16,128], index: 3, kind: output, shape index: {}]  }
   0x1   :  { %v15_v0 = vld [vmem:[%s4740_s1] sm:$0xff]  ;;  %v16_v1 = vld [vmem:[%s4740_s1 + $0x8] sm:$0xff]  ;;  %v17_v2 = vld [vmem:[%s4740_s1 + $0x10] sm:$0xff] }
   0x2   :  { %v3620_v3 = vpack.c.bf16 %v16_v1, %v15_v0  ;;  %v18_v4 = vld [vmem:[%s4740_s1 + $0x18] sm:$0xff]  ;;  %v19_v6 = vld [vmem:[%s4740_s1 + $0x20] sm:$0xff]  ;;  %v20_v7 = vld [vmem:[%s4740_s1 + $0x28] sm:$0xff] }
   0x3   :  { %v3624_v5 = vpack.c.bf16 %v18_v4, %v17_v2  ;;  %v3628_v8 = vpack.c.bf16 %v20_v7, %v19_v6  ;;  %v31_v9 = vld [vmem:[%s4739_s0] sm:$0xff]  ;;  %v21_v10 = vld [vmem:[%s4740_s1 + $0x30] sm:$0xff]  ;;  %v22_v11 = vld [vmem:[%s4740_s1 + $0x38] sm:$0xff] }
   0x4   :  { %3621 = vmatprep.subr.bf16.mxu0 %v3620_v3  ;;  %3314 = vmatprep.mubr.f32.mxu0 %v31_v9 }
   0x5   :  { %3623 = vmatpush3.bf16.msra.mxu0 %v3620_v3 }
   0x6   :  { %3625 = vmatprep.subr.bf16.mxu0 %v3624_v5 }
   0x7   :  { %8 = vsyncpa [#allocation3], 0  ;;  %v3632_v12 = vpack.c.bf16 %v22_v11, %v21_v10  ;;  %v23_v13 = vld [vmem:[%s4740_s1 + $0x40] sm:$0xff]  ;;  %v24_v14 = vld [vmem:[%s4740_s1 + $0x48] sm:$0xff]  ;;  %vm182_vm0 = vcmask 261120   ;;  %v109_v54 = vlaneseq  ;;  %s4011_s12 = smov [#allocation2]  }
   0x8   :  { %v3636_v15 = vpack.c.bf16 %v24_v14, %v23_v13  ;;  %v25_v16 = vld [vmem:[%s4740_s1 + $0x50] sm:$0xff]  ;;  %v26_v17 = vld [vmem:[%s4740_s1 + $0x58] sm:$0xff]  ;;  %v27_v19 = vld [vmem:[%s4740_s1 + $0x60] sm:$0xff] }
   0x9   :  { %3627 = vmatpush3.bf16.msra.mxu0 %v3624_v5  ;;  %v3640_v18 = vpack.c.bf16 %v26_v17, %v25_v16  ;;  %v28_v20 = vld [vmem:[%s4740_s1 + $0x68] sm:$0xff]  ;;  %v29_v22 = vld [vmem:[%s4740_s1 + $0x70] sm:$0xff]  ;;  %v30_v23 = vld [vmem:[%s4740_s1 + $0x78] sm:$0xff]  ;;  %v4121_v58 = vshrl.u32 %v109_v54, 7 }
   0xa   :  { %3629 = vmatprep.subr.bf16.mxu0 %v3628_v8  ;;  %v3644_v21 = vpack.c.bf16 %v28_v20, %v27_v19  ;;  %v3648_v24 = vpack.c.bf16 %v30_v23, %v29_v22  ;;  %v32_v25 = vld [vmem:[%s4739_s0 + $0x8] sm:$0xff]  ;;  %v33_v26 = vld [vmem:[%s4740_s1 + $0x80] sm:$0xff]  ;;  %v146_v44 = vld [vmem:[%s4740_s1 + $0x90] sm:$0xff] }
   0xb   :  { %v145_v43 = vld [vmem:[%s4740_s1 + $0x88] sm:$0xff]  ;;  %v147_v45 = vld [vmem:[%s4740_s1 + $0x98] sm:$0xff]  ;;  %v148_v47 = vld [vmem:[%s4740_s1 + $0xa0] sm:$0xff]  ;;  %v4124_v60 = vsub.s32 0, %v4121_v58  ;;  %v4132_v62 = vsub.s32 1, %v4121_v58 }
   0xc   :  { %v3652_v46 = vpack.c.bf16 %v146_v44, %v145_v43  ;;  %v3656_v48 = vpack.c.bf16 %v148_v47, %v147_v45  ;;  %v149_v49 = vld [vmem:[%s4740_s1 + $0xa8] sm:$0xff]  ;;  %v150_v50 = vld [vmem:[%s4740_s1 + $0xb0] sm:$0xff]  ;;  %v4129_v61 = vld [vmem:[%s4741_s2 + $0x60] sm:$0xff] }
   0xd   :  { %3631 = vmatpush3.bf16.msra.mxu0 %v3628_v8  ;;  %v3660_v51 = vpack.c.bf16 %v150_v50, %v149_v49  ;;  %v213_v63 = vrot.slane %v4129_v61, %v4124_v60  ;;  %v219_v2 = vrot.slane %v4129_v61, %v4132_v62  ;;  %v151_v7 = vld [vmem:[%s4740_s1 + $0xb8] sm:$0xff]  ;;  %v152_v8 = vld [vmem:[%s4740_s1 + $0xc0] sm:$0xff]  ;;  %v154_v13 = vld [vmem:[%s4740_s1 + $0xd0] sm:$0xff] }
   0xe   :  { %3633 = vmatprep.subr.bf16.mxu0 %v3632_v12  ;;  %3653 = vmatprep.subr.bf16.mxu1 %v3652_v46  ;;  %v3664_v11 = vpack.c.bf16 %v152_v8, %v151_v7  ;;  %v156_v16 = vld [vmem:[%s4740_s1 + $0xe0] sm:$0xff]  ;;  %vm4197_vm11 = vmpackc.low %vm182_vm0, %vm182_vm0 }
   0xf   :  { %3655 = vmatpush3.bf16.msra.mxu1 %v3652_v46 }
  0x10   :  { %3657 = vmatprep.subr.bf16.mxu1 %v3656_v48 }
  0x11   :  { %3635 = vmatpush3.bf16.msra.mxu0 %v3632_v12  ;;  %v153_v12 = vld [vmem:[%s4740_s1 + $0xc8] sm:$0xff] }
  0x12   :  { %3637 = vmatprep.subr.bf16.mxu0 %v3636_v15  ;;  %v3668_v14 = vpack.c.bf16 %v154_v13, %v153_v12 }
  0x13   :  { %3659 = vmatpush3.bf16.msra.mxu1 %v3656_v48 }
  0x14   :  { %3661 = vmatprep.subr.bf16.mxu1 %v3660_v51 }
  0x15   :  { %3639 = vmatpush3.bf16.msra.mxu0 %v3636_v15  ;;  %v155_v15 = vld [vmem:[%s4740_s1 + $0xd8] sm:$0xff] }
  0x16   :  { %3641 = vmatprep.subr.bf16.mxu0 %v3640_v18  ;;  %v3672_v17 = vpack.c.bf16 %v156_v16, %v155_v15 }
  0x19   :  { %3643 = vmatpush3.bf16.msra.mxu0 %v3640_v18  ;;  %v4162_v18 = vand.u32 127, %v109_v54 }
  0x1a   :  { %3645 = vmatprep.subr.bf16.mxu0 %v3644_v21 }
  0x1b   :  { %vm130_vm1 = vcmp.ge.s32.totalorder %v4162_v18, 8  ;;  %vm131_vm2 = vcmp.lt.s32.totalorder %v4162_v18, 16  ;;  %vm135_vm3 = vcmp.ge.s32.totalorder %v4162_v18, 16  ;;  %vm136_vm4 = vcmp.lt.s32.totalorder %v4162_v18, 24 }
  0x1c   :  { %vm140_vm5 = vcmp.ge.s32.totalorder %v4162_v18, 24  ;;  %vm141_vm6 = vcmp.lt.s32.totalorder %v4162_v18, 32  ;;  %vm132_vm7 = vmand %vm130_vm1, %vm131_vm2  ;;  %vm126_vm9 = vcmp.lt.s32.totalorder %v4162_v18, 8  ;;  %vm114_vm14 = vcmp.le.s32.totalorder %v4162_v18, %v4121_v58 }
  0x1d   :  { %3647 = vmatpush3.bf16.msra.mxu0 %v3644_v21  ;;  %vm137_vm8 = vmand %vm135_vm3, %vm136_vm4  ;;  %v4009_v21 = vmov 0.0   ;;  %vm542_vm3 = vcmask 130048  }
  0x1e   :  { %3649 = vmatprep.subr.bf16.mxu0 %v3648_v24  ;;  %vm142_vm10 = vmand %vm140_vm5, %vm141_vm6  ;;  %v4179_v22 = vsel %vm126_vm9, 1.0, %v4009_v21  ;;  %v4181_v23 = vsel %vm132_vm7, 1.0, %v4009_v21 }
  0x21   :  { %3651 = vmatpush3.bf16.msra.mxu0 %v3648_v24  ;;  %v4183_v24 = vsel %vm137_vm8, 1.0, %v4009_v21 }
  0x24   :  { %3315 = vmatmul.mubr.f32.vlgmr.msra.gmra.mrb[0].mxu0 %v32_v25  ;;  %v4185_v25 = vsel %vm142_vm10, 1.0, %v4009_v21 }
  0xf7   :  { %v3316_v27 = vpop.f32.mrb[0].mxu0 }
  0xf8   :  { %v100_v28 = vpop.f32.mrb[1].mxu0  ;;  %v4093_v30 = vadd.f32 %v3316_v27, %v33_v26 }
  0xf9   :  { %v4091_v29 = vadd.f32 %v100_v28, %v33_v26 }
  0xfa   :  { %v186_v32 = vsel %vm182_vm0, %v4093_v30, 0.0 }
  0xfb   :  { %v183_v31 = vsel %vm182_vm0, %v4091_v29, 0.0 }
  0xfc   :  { %184 = vadd.xlane.f32.xlu0 %v183_v31 }
 0x100   :  { %187 = vadd.xlane.f32.xlu0 %v186_v32 }
 0x189   :  { %v185_v33 = vpop.xlane.xlu0 %184 }
 0x18a   :  { %v190_v34 = vmul.f32 0.03125, %v185_v33 }
 0x18c   :  { %v192_v35 = vsub.f32 %v4091_v29, %v190_v34 }
 0x18d   :  { %v188_v36 = vpop.xlane.xlu0 %187 }
 0x18e   :  { %v191_v37 = vmul.f32 0.03125, %v188_v36  ;;  %v194_v38 = vmul.f32 %v192_v35, %v192_v35 }
 0x190   :  { %v193_v39 = vsub.f32 %v4093_v30, %v191_v37  ;;  %v196_v40 = vsel %vm182_vm0, %v194_v38, 0.0 }
 0x191   :  { %197 = vadd.xlane.f32.xlu1 %v196_v40 }
 0x192   :  { %v195_v41 = vmul.f32 %v193_v39, %v193_v39 }
 0x194   :  { %v199_v42 = vsel %vm182_vm0, %v195_v41, 0.0 }
 0x195   :  { %200 = vadd.xlane.f32.xlu1 %v199_v42 }
 0x21e   :  { %v198_v52 = vpop.xlane.xlu1 %197 }
 0x21f   :  { %v202_v53 = vmul.f32 0.03125, %v198_v52 }
 0x221   :  { %v204_v55 = vadd.f32 1e-05, %v202_v53 }
 0x222   :  { %v201_v56 = vpop.xlane.xlu1 %200 }
 0x223   :  { %3901 = vrsqrt.f32 %v204_v55  ;;  %v203_v57 = vmul.f32 0.03125, %v201_v56 }
 0x225   :  { %v205_v59 = vadd.f32 1e-05, %v203_v57  ;;  %v111_v57 = vadd.s32 8, %v4121_v58 }
 0x227   :  { %3903 = vrsqrt.f32 %v205_v59  ;;  %v117_v59 = vshra.s32 %v111_v57, 3  ;;  %vm115_vm12 = vcmp.le.s32.totalorder %v4162_v18, %v111_v57 }
 0x22d   :  { %v3902_v0 = vpop.eup %3901 }
 0x22e   :  { %v208_v1 = vmul.f32 %v3902_v0, %v192_v35  ;;  %v116_v0 = vshra.s32 %v4121_v58, 3 }
 0x230   :  { %v214_v3 = vmul.f32 %v213_v63, %v208_v1 }
 0x231   :  { %v3904_v4 = vpop.eup %3903 }
 0x232   :  { %v220_v5 = vadd.f32 %v219_v2, %v214_v3  ;;  %v209_v6 = vmul.f32 %v3904_v4, %v193_v39 }
 0x234   :  { %3325 = vmatprep.mubr.msk.f32.mxu1 %vm182_vm0, %v220_v5  ;;  %v215_v9 = vmul.f32 %v213_v63, %v209_v6  ;;  %v118_v63 = vshra.s32 %v4162_v18, 3 }
 0x236   :  { %v221_v10 = vadd.f32 %v219_v2, %v215_v9  ;;  %vm120_vm13 = vcmp.eq.s32.totalorder %v117_v59, %v118_v63  ;;  %vm119_vm15 = vcmp.eq.s32.totalorder %v116_v0, %v118_v63 }
 0x237   :  { %vm122_vm1 = vmand %vm115_vm12, %vm120_vm13 }
 0x238   :  { %3326 = vmatmul.mubr.msk.f32.vlgmr.msra.gmra.mrb[0].mxu1 %vm182_vm0, %v221_v10  ;;  %vm121_vm2 = vmand %vm114_vm14, %vm119_vm15 }
 0x239   :  { %3663 = vmatpush3.bf16.msra.mxu1 %v3660_v51  ;;  %3336 = vmatprep.mubr.msk.f32.mxu1 %vm182_vm0, %v220_v5 }
 0x23a   :  { %3665 = vmatprep.subr.bf16.mxu1 %v3664_v11 }
 0x23d   :  { %3667 = vmatpush3.bf16.msra.mxu1 %v3664_v11 }
 0x23e   :  { %3669 = vmatprep.subr.bf16.mxu1 %v3668_v14 }
 0x240   :  { %3337 = vmatmul.mubr.msk.f32.vlgmr.msra.gmra.mrb[2].mxu1 %vm182_vm0, %v221_v10 }
 0x241   :  { %3671 = vmatpush3.bf16.msra.mxu1 %v3668_v14  ;;  %3347 = vmatprep.mubr.msk.f32.mxu1 %vm182_vm0, %v220_v5  ;;  %v4010_v5 = vmov -1e+30  }
 0x242   :  { %3673 = vmatprep.subr.bf16.mxu1 %v3672_v17  ;;  %v4244_v6 = vsel %vm122_vm1, 0.0, %v4010_v5  ;;  %v4246_v8 = vsel %vm121_vm2, 0.0, %v4010_v5 }
 0x245   :  { %3675 = vmatpush3.bf16.msra.mxu1 %v3672_v17 }
 0x248   :  { %3348 = vmatmul.mubr.msk.f32.vlgmr.msra.gmra.mrb[4].mxu1 %vm182_vm0, %v221_v10 }
 0x30b   :  { %v4168_v19 = vpop.f32.mrb[0].mxu1 }
 0x30c   :  { %v4172_v20 = vpop.f32.mrb[1].mxu1 }
 0x30d   :  { %3354 = vmatprep.mubr.msk.f32.mxu1 %vm182_vm0, %v4172_v20  ;;  %3382 = vmatprep.mubr.msk.f32.mxu0 %vm182_vm0, %v4172_v20 }
 0x313   :  { %v3338_v26 = vpop.f32.mrb[2].mxu1 }
 0x314   :  { %v454_v27 = vmul.f32 %v3338_v26, %v4179_v22  ;;  %v568_v28 = vmul.f32 %v3338_v26, %v4181_v23  ;;  %v837_v31 = vmul.f32 %v3338_v26, %v4183_v24  ;;  %v1027_v32 = vmul.f32 %v3338_v26, %v4185_v25  ;;  %v369_v33 = vpop.f32.mrb[3].mxu1 }
 0x315   :  { %v453_v34 = vmul.f32 %v4179_v22, %v369_v33  ;;  %v567_v35 = vmul.f32 %v4181_v23, %v369_v33  ;;  %v836_v36 = vmul.f32 %v4183_v24, %v369_v33  ;;  %v1026_v37 = vmul.f32 %v4185_v25, %v369_v33 }
 0x317   :  { %v3676_v39 = vpack.c.bf16 %v454_v27, %v453_v34  ;;  %v3696_v40 = vpack.c.bf16 %v837_v31, %v836_v36  ;;  %v3682_v41 = vpack.c.bf16 %v568_v28, %v567_v35  ;;  %v4201_v42 = vpack.c.bf16 %v1027_v32, %v1026_v37 }
 0x319   :  { %3678 = vmatprep.subr.msk.bf16.mxu1 %vm4197_vm11, %v3676_v39  ;;  %3698 = vmatprep.subr.msk.bf16.mxu0 %vm4197_vm11, %v3696_v40 }
 0x31a   :  { %3681 = vmatpush3.bf16.xpose.msk.msra.mxu1 %vm4197_vm11, %v3676_v39  ;;  %3701 = vmatpush3.bf16.xpose.msk.msra.mxu0 %vm4197_vm11, %v3696_v40 }
 0x31b   :  { %v3349_v43 = vpop.f32.mrb[4].mxu1  ;;  %3684 = vmatprep.subr.msk.bf16.mxu1 %vm4197_vm11, %v3682_v41 }
 0x31c   :  { %v566_v44 = vmul.f32 %v3349_v43, %v4179_v22  ;;  %v673_v45 = vmul.f32 %v3349_v43, %v4181_v23  ;;  %v942_v46 = vmul.f32 %v3349_v43, %v4183_v24  ;;  %v1132_v47 = vmul.f32 %v3349_v43, %v4185_v25  ;;  %v444_v48 = vpop.f32.mrb[5].mxu1 }
 0x31d   :  { %v565_v49 = vmul.f32 %v4179_v22, %v444_v48  ;;  %v672_v50 = vmul.f32 %v4181_v23, %v444_v48  ;;  %v941_v51 = vmul.f32 %v4183_v24, %v444_v48  ;;  %v1131_v52 = vmul.f32 %v4185_v25, %v444_v48 }
 0x31f   :  { %v3688_v53 = vpack.c.bf16 %v673_v45, %v672_v50  ;;  %v4221_v54 = vpack.c.bf16 %v566_v44, %v565_v49  ;;  %v4223_v55 = vpack.c.bf16 %v942_v46, %v941_v51  ;;  %v4225_v56 = vpack.c.bf16 %v1132_v47, %v1131_v52 }
 0x321   :  { %3355 = vmatmul.mubr.msk.f32.vlgmr.msra.gmra.mrb[6].mxu1 %vm182_vm0, %v4168_v19  ;;  %3383 = vmatmul.mubr.msk.f32.vlgmr.msra.gmra.mrb[2].mxu0 %vm182_vm0, %v4168_v19 }
 0x322   :  { %3687 = vmatpush3.bf16.xpose.msk.msra.mxu1 %vm4197_vm11, %v3682_v41  ;;  %3361 = vmatprep.mubr.msk.f32.mxu1 %vm182_vm0, %v4172_v20 }
 0x323   :  { %3689 = vmatprep.subr.bf16.mxu1 %v3688_v53 }
 0x329   :  { %3362 = vmatmul.mubr.msk.f32.vlgmr.msra.gmra.mrb[8].mxu1 %vm182_vm0, %v4168_v19 }
 0x32a   :  { %3691 = vmatpush3.bf16.msra.mxu1 %v3688_v53 }
 0x32b   :  { %3693 = vmatprep.subr.bf16.mxu1 %v4221_v54 }
 0x3f4   :  { %v3356_v1 = vpop.f32.mrb[6].mxu1  ;;  %v3384_v2 = vpop.f32.mrb[2].mxu0 }
 0x3f5   :  { %v533_v3 = vpop.f32.mrb[7].mxu1  ;;  %v910_v4 = vpop.f32.mrb[3].mxu0  ;;  %v539_v12 = vadd.f32 %v3356_v1, %v4244_v6  ;;  %v916_v16 = vadd.f32 %v3384_v2, %v4244_v6 }
 0x3f6   :  { %v534_v14 = vadd.f32 %v533_v3, %v4246_v8  ;;  %v911_v18 = vadd.f32 %v910_v4, %v4246_v8 }
 0x3f7   :  { %v546_v17 = vsel %vm542_vm3, %v539_v12, -inf  ;;  %v922_v26 = vsel %vm542_vm3, %v916_v16, -inf }
 0x3f8   :  { %v543_v21 = vsel %vm542_vm3, %v534_v14, -inf  ;;  %v919_v27 = vsel %vm542_vm3, %v911_v18, -inf }
 0x3fc   :  { %v3363_v7 = vpop.f32.mrb[8].mxu1 }
 0x3fd   :  { %v647_v9 = vadd.f32 %v3363_v7, %v4244_v6  ;;  %v641_v10 = vpop.f32.mrb[9].mxu1 }
 0x3fe   :  { %v642_v11 = vadd.f32 %v641_v10, %v4246_v8 }
 0x3ff   :  { %v653_v13 = vsel %vm542_vm3, %v647_v9, -inf }
 0x400   :  { %654 = vmax.xlane.f32.xlu1 %v653_v13  ;;  %v650_v15 = vsel %vm542_vm3, %v642_v11, -inf }
 0x401   :  { %651 = vmax.xlane.f32.xlu0 %v650_v15 }
 0x404   :  { %547 = vmax.xlane.f32.xlu1 %v546_v17 }
 0x405   :  { %544 = vmax.xlane.f32.xlu0 %v543_v21 }
 0x408   :  { %923 = vmax.xlane.f32.xlu1 %v922_v26 }
 0x409   :  { %920 = vmax.xlane.f32.xlu0 %v919_v27 }
 0x48d   :  { %v655_v28 = vpop.xlane.xlu1 %654 }
 0x48e   :  { %v657_v31 = vsub.f32 %v647_v9, %v655_v28  ;;  %v652_v32 = vpop.xlane.xlu0 %651 }
 0x48f   :  { %v656_v33 = vsub.f32 %v642_v11, %v652_v32 }
 0x490   :  { %v660_v34 = vmul.f32 1.442695, %v657_v31 }
 0x491   :  { %v658_v35 = vmul.f32 1.442695, %v656_v33  ;;  %v548_v36 = vpop.xlane.xlu1 %547 }
 0x492   :  { %3905 = vpow2.f32 %v660_v34  ;;  %v550_v37 = vsub.f32 %v539_v12, %v548_v36  ;;  %v545_v39 = vpop.xlane.xlu0 %544 }
 0x493   :  { %3907 = vpow2.f32 %v658_v35  ;;  %v549_v40 = vsub.f32 %v534_v14, %v545_v39 }
 0x494   :  { %v553_v41 = vmul.f32 1.442695, %v550_v37 }
 0x495   :  { %v551_v43 = vmul.f32 1.442695, %v549_v40  ;;  %v924_v44 = vpop.xlane.xlu1 %923 }
 0x496   :  { %3909 = vpow2.f32 %v553_v41  ;;  %v926_v45 = vsub.f32 %v916_v16, %v924_v44  ;;  %v921_v46 = vpop.xlane.xlu0 %920 }
 0x497   :  { %3911 = vpow2.f32 %v551_v43  ;;  %v925_v47 = vsub.f32 %v911_v18, %v921_v46  ;;  %v158_v46 = vld [vmem:[%s4740_s1 + $0xf0] sm:$0xff] }
 0x498   :  { %v929_v48 = vmul.f32 1.442695, %v926_v45  ;;  %v157_v45 = vld [vmem:[%s4740_s1 + $0xe8] sm:$0xff] }
 0x499   :  { %v927_v49 = vmul.f32 1.442695, %v925_v47  ;;  %v159_v47 = vld [vmem:[%s4740_s1 + $0xf8] sm:$0xff] }
 0x49a   :  { %3913 = vpow2.f32 %v929_v48  ;;  %v3716_v48 = vpack.c.bf16 %v158_v46, %v157_v45  ;;  %v170_v45 = vld [vmem:[%s4740_s1 + $0x150] sm:$0xff] }
 0x49b   :  { %3915 = vpow2.f32 %v927_v49  ;;  %v160_v49 = vld [vmem:[%s4740_s1 + $0x100] sm:$0xff] }
 0x49c   :  { %v3906_v50 = vpop.eup %3905  ;;  %3717 = vmatprep.subr.bf16.mxu0 %v3716_v48 }
 0x49d   :  { %v3908_v51 = vpop.eup %3907  ;;  %v665_v52 = vsel %vm542_vm3, %v3906_v50, 0.0  ;;  %3719 = vmatpush3.bf16.msra.mxu0 %v3716_v48  ;;  %v172_v48 = vld [vmem:[%s4740_s1 + $0x160] sm:$0xff] }
 0x49e   :  { %666 = vadd.xlane.f32.xlu1 %v665_v52  ;;  %v662_v53 = vsel %vm542_vm3, %v3908_v51, 0.0 }
 0x49f   :  { %663 = vadd.xlane.f32.xlu0 %v662_v53 }
 0x4a0   :  { %v3910_v57 = vpop.eup %3909 }
 0x4a1   :  { %v3912_v59 = vpop.eup %3911  ;;  %v558_v63 = vsel %vm542_vm3, %v3910_v57, 0.0 }
 0x4a2   :  { %559 = vadd.xlane.f32.xlu1 %v558_v63  ;;  %v555_v0 = vsel %vm542_vm3, %v3912_v59, 0.0 }
 0x4a3   :  { %556 = vadd.xlane.f32.xlu0 %v555_v0 }
 0x4a4   :  { %v3914_v1 = vpop.eup %3913 }
 0x4a5   :  { %v3916_v2 = vpop.eup %3915  ;;  %v934_v3 = vsel %vm542_vm3, %v3914_v1, 0.0 }
 0x4a6   :  { %935 = vadd.xlane.f32.xlu1 %v934_v3  ;;  %v931_v4 = vsel %vm542_vm3, %v3916_v2, 0.0 }
 0x4a7   :  { %932 = vadd.xlane.f32.xlu0 %v931_v4 }
 0x52b   :  { %v667_v5 = vpop.xlane.xlu1 %666 }
 0x52c   :  { %3917 = vrcp.f32 %v667_v5  ;;  %v664_v7 = vpop.xlane.xlu0 %663 }
 0x52d   :  { %3919 = vrcp.f32 %v664_v7 }
 0x52f   :  { %v560_v10 = vpop.xlane.xlu1 %559 }
 0x530   :  { %v557_v9 = vpop.xlane.xlu0 %556 }
 0x531   :  { %3921 = vrcp.f32 %v557_v9 }
 0x532   :  { %3923 = vrcp.f32 %v560_v10 }
 0x533   :  { %v936_v16 = vpop.xlane.xlu1 %935 }
 0x534   :  { %v933_v11 = vpop.xlane.xlu0 %932 }
 0x535   :  { %3925 = vrcp.f32 %v933_v11 }
 0x536   :  { %v3918_v12 = vpop.eup %3917  ;;  %3927 = vrcp.f32 %v936_v16 }
 0x537   :  { %v3920_v13 = vpop.eup %3919  ;;  %v671_v15 = vmul.f32 %v3918_v12, %v3906_v50  ;;  %v3720_v50 = vpack.c.bf16 %v160_v49, %v159_v47  ;;  %v171_v47 = vld [vmem:[%s4740_s1 + $0x158] sm:$0xff] }
 0x538   :  { %v669_v14 = vmul.f32 %v3920_v13, %v3908_v51  ;;  %v3752_v49 = vpack.c.bf16 %v172_v48, %v171_v47 }
 0x539   :  { %3721 = vmatprep.subr.bf16.mxu0 %v3720_v50 }
 0x53a   :  { %3368 = vmatprep.mubr.msk.f32.mxu1 %vm542_vm3, %v669_v14  ;;  %3723 = vmatpush3.bf16.msra.mxu0 %v3720_v50  ;;  %v173_v50 = vld [vmem:[%s4740_s1 + $0x168] sm:$0xff] }
 0x53b   :  { %v3922_v17 = vpop.eup %3921  ;;  %3369 = vmatmul.mubr.msk.f32.vlgmr.msra.gmra.mrb[10].mxu1 %vm542_vm3, %v671_v15 }
 0x53c   :  { %3695 = vmatpush3.bf16.msra.mxu1 %v4221_v54  ;;  %v562_v18 = vmul.f32 %v3922_v17, %v3912_v59  ;;  %v3924_v21 = vpop.eup %3923 }
 0x53d   :  { %3703 = vmatprep.subr.bf16.mxu1 %v4223_v55  ;;  %v564_v27 = vmul.f32 %v3924_v21, %v3910_v57 }
 0x53e   :  { %3375 = vmatprep.mubr.msk.f32.mxu1 %vm542_vm3, %v562_v18 }
 0x53f   :  { %v3926_v26 = vpop.eup %3925 }
 0x540   :  { %v938_v28 = vmul.f32 %v3926_v26, %v3916_v2  ;;  %v3928_v54 = vpop.eup %3927  ;;  %v4310_v2 = vsub.s32 2, %v4121_v58 }
 0x541   :  { %v940_v31 = vmul.f32 %v3928_v54, %v3914_v1  ;;  %v178_v54 = vld [vmem:[%s4741_s2 + $0x8] sm:$0xff] }
 0x542   :  { %v1302_v3 = vrot.slane %v4129_v61, %v4310_v2 }
 0x543   :  { %3376 = vmatmul.mubr.msk.f32.vlgmr.msra.gmra.mrb[10].mxu1 %vm542_vm3, %v564_v27 }
 0x544   :  { %3705 = vmatpush3.bf16.msra.mxu1 %v4223_v55  ;;  %3389 = vmatprep.mubr.msk.f32.mxu1 %vm542_vm3, %v938_v28  ;;  %v177_v28 = vld [vmem:[%s4741_s2] sm:$0xff] }
 0x545   :  { %3708 = vmatprep.subr.msk.bf16.mxu1 %vm4197_vm11, %v4201_v42 }
 0x54b   :  { %3390 = vmatmul.mubr.msk.f32.vlgmr.msra.gmra.mrb[10].mxu1 %vm542_vm3, %v940_v31  ;;  %v3724_v31 = vpack.c.bf16 %v178_v54, %v177_v28 }
 0x54c   :  { %3396 = vmatprep.mubr.msk.f32.mxu1 %vm182_vm0, %v4172_v20 }
 0x54d   :  { %3711 = vmatpush3.bf16.xpose.msk.msra.mxu1 %vm4197_vm11, %v4201_v42  ;;  %3725 = vmatprep.subr.bf16.mxu0 %v3724_v31 }
 0x54e   :  { %3713 = vmatprep.subr.bf16.mxu1 %v4225_v56 }
 0x554   :  { %3397 = vmatmul.mubr.msk.f32.vlgmr.msra.gmra.mrb[12].mxu1 %vm182_vm0, %v4168_v19 }
 0x555   :  { %3715 = vmatpush3.bf16.msra.mxu1 %v4225_v56 }
 0x627   :  { %v3398_v55 = vpop.f32.mrb[12].mxu1 }
 0x628   :  { %v1106_v32 = vadd.f32 %v3398_v55, %v4244_v6  ;;  %v1100_v33 = vpop.f32.mrb[13].mxu1  ;;  %v179_v55 = vld [vmem:[%s4741_s2 + $0x10] sm:$0xff] }
 0x629   :  { %v1101_v34 = vadd.f32 %v1100_v33, %v4246_v8 }
 0x62a   :  { %v1112_v35 = vsel %vm542_vm3, %v1106_v32, -inf }
 0x62b   :  { %1113 = vmax.xlane.f32.xlu1 %v1112_v35  ;;  %v1109_v20 = vsel %vm542_vm3, %v1101_v34, -inf  ;;  %v162_v35 = vld [vmem:[%s4740_s1 + $0x110] sm:$0xff] }
 0x62c   :  { %1110 = vmax.xlane.f32.xlu0 %v1109_v20  ;;  %v163_v20 = vld [vmem:[%s4740_s1 + $0x118] sm:$0xff] }
 0x6b8   :  { %v1114_v42 = vpop.xlane.xlu1 %1113 }
 0x6b9   :  { %v1116_v36 = vsub.f32 %v1106_v32, %v1114_v42  ;;  %v1111_v37 = vpop.xlane.xlu0 %1110  ;;  %v180_v32 = vld [vmem:[%s4741_s2 + $0x18] sm:$0xff] }
 0x6ba   :  { %v1115_v39 = vsub.f32 %v1101_v34, %v1111_v37  ;;  %v3728_v33 = vpack.c.bf16 %v180_v32, %v179_v55  ;;  %v161_v34 = vld [vmem:[%s4740_s1 + $0x108] sm:$0xff] }
 0x6bb   :  { %v1119_v40 = vmul.f32 1.442695, %v1116_v36  ;;  %v3732_v42 = vpack.c.bf16 %v162_v35, %v161_v34  ;;  %v164_v36 = vld [vmem:[%s4740_s1 + $0x120] sm:$0xff]  ;;  %v1509_v34 = vsub.s32 6, %v4121_v58 }
 0x6bc   :  { %v1117_v19 = vmul.f32 1.442695, %v1115_v39  ;;  %v3736_v37 = vpack.c.bf16 %v164_v36, %v163_v20  ;;  %v165_v39 = vld [vmem:[%s4740_s1 + $0x128] sm:$0xff] }
 0x6bd   :  { %3929 = vpow2.f32 %v1119_v40  ;;  %v166_v40 = vld [vmem:[%s4740_s1 + $0x130] sm:$0xff]  ;;  %3733 = vmatprep.subr.bf16.mxu1 %v3732_v42  ;;  %v1510_v35 = vrot.slane %v4129_v61, %v1509_v34 }
 0x6be   :  { %3931 = vpow2.f32 %v1117_v19  ;;  %v3740_v19 = vpack.c.bf16 %v166_v40, %v165_v39 }
 0x6c7   :  { %v3930_v56 = vpop.eup %3929 }
 0x6c8   :  { %v3932_v41 = vpop.eup %3931  ;;  %v1124_v43 = vsel %vm542_vm3, %v3930_v56, 0.0 }
 0x6c9   :  { %1125 = vadd.xlane.f32.xlu1 %v1124_v43  ;;  %v1121_v44 = vsel %vm542_vm3, %v3932_v41, 0.0 }
 0x6ca   :  { %1122 = vadd.xlane.f32.xlu0 %v1121_v44  ;;  %v169_v44 = vld [vmem:[%s4740_s1 + $0x148] sm:$0xff] }
 0x6cb   :  { %v3748_v46 = vpack.c.bf16 %v170_v45, %v169_v44 }
 0x756   :  { %v1126_v51 = vpop.xlane.xlu1 %1125 }
 0x757   :  { %3933 = vrcp.f32 %v1126_v51  ;;  %v1123_v52 = vpop.xlane.xlu0 %1122  ;;  %v174_v51 = vld [vmem:[%s4740_s1 + $0x170] sm:$0xff] }
 0x758   :  { %3935 = vrcp.f32 %v1123_v52  ;;  %v3756_v52 = vpack.c.bf16 %v174_v51, %v173_v50  ;;  %v1514_v50 = vld [vmem:[%s4740_s1 + $0x190] sm:$0xff] }
 0x761   :  { %v3934_v53 = vpop.eup %3933 }
 0x762   :  { %v3936_v57 = vpop.eup %3935  ;;  %v1130_v63 = vmul.f32 %v3934_v53, %v3930_v56  ;;  %v167_v56 = vld [vmem:[%s4740_s1 + $0x138] sm:$0xff] }
 0x763   :  { %v1128_v59 = vmul.f32 %v3936_v57, %v3932_v41  ;;  %v168_v41 = vld [vmem:[%s4740_s1 + $0x140] sm:$0xff] }
 0x764   :  { %v3744_v43 = vpack.c.bf16 %v168_v41, %v167_v56 }
 0x765   :  { %3403 = vmatprep.mubr.msk.f32.mxu1 %vm542_vm3, %v1128_v59 }
 0x766   :  { %3404 = vmatmul.mubr.msk.f32.vlgmr.msra.gmra.mrb[10].mxu1 %vm542_vm3, %v1130_v63 }
 0x767   :  { %3735 = vmatpush3.bf16.msra.mxu1 %v3732_v42 }
 0x768   :  { %3737 = vmatprep.subr.bf16.mxu1 %v3736_v37 }
 0x76b   :  { %3739 = vmatpush3.bf16.msra.mxu1 %v3736_v37 }
 0x76c   :  { %3741 = vmatprep.subr.bf16.mxu1 %v3740_v19 }
 0x76f   :  { %3743 = vmatpush3.bf16.msra.mxu1 %v3740_v19 }
 0x770   :  { %3745 = vmatprep.subr.bf16.mxu1 %v3744_v43 }
 0x773   :  { %3747 = vmatpush3.bf16.msra.mxu1 %v3744_v43 }
 0x774   :  { %3749 = vmatprep.subr.bf16.mxu1 %v3748_v46 }
 0x777   :  { %3751 = vmatpush3.bf16.msra.mxu1 %v3748_v46 }
 0x778   :  { %3753 = vmatprep.subr.bf16.mxu1 %v3752_v49 }
 0x77b   :  { %3755 = vmatpush3.bf16.msra.mxu1 %v3752_v49  ;;  %v1513_v49 = vld [vmem:[%s4740_s1 + $0x188] sm:$0xff] }
 0x77c   :  { %3757 = vmatprep.subr.bf16.mxu1 %v3756_v52  ;;  %v3764_v51 = vpack.c.bf16 %v1514_v50, %v1513_v49 }
 0x77f   :  { %3759 = vmatpush3.bf16.msra.mxu1 %v3756_v52  ;;  %v1515_v52 = vld [vmem:[%s4740_s1 + $0x198] sm:$0xff] }
 0x839   :  { %v3405_v0 = vpop.f32.mrb[10].mxu1 }
 0x83a   :  { %v1205_v1 = vpop.f32.mrb[11].mxu1 }
 0x83b   :  { %3414 = vmatprep.mubr.msk.f32.mxu0 %vm182_vm0, %v1205_v1 }
 0x83c   :  { %3415 = vmatmul.mubr.msk.f32.vlgmr.msra.gmra.mrb[4].mxu0 %vm182_vm0, %v3405_v0 }
 0x83d   :  { %3727 = vmatpush3.bf16.msra.mxu0 %v3724_v31 }
 0x83e   :  { %3729 = vmatprep.subr.bf16.mxu0 %v3728_v33 }
 0x841   :  { %3731 = vmatpush3.bf16.msra.mxu0 %v3728_v33 }
 0x842   :  { %3765 = vmatprep.subr.bf16.mxu0 %v3764_v51 }
 0x90f   :  { %v3416_v4 = vpop.f32.mrb[4].mxu0 }
 0x910   :  { %v1298_v5 = vadd.f32 %v3416_v4, %v4093_v30  ;;  %v1288_v7 = vpop.f32.mrb[5].mxu0  ;;  %v1339_v4 = vsub.s32 4, %v4121_v58 }
 0x911   :  { %v1297_v9 = vadd.f32 %v1288_v7, %v4091_v29 }
 0x912   :  { %v4316_v10 = vadd.f32 %v1302_v3, %v1298_v5 }
 0x913   :  { %v4318_v11 = vadd.f32 %v1302_v3, %v1297_v9  ;;  %v1333_v3 = vsub.s32 3, %v4121_v58 }
 0x914   :  { %v1308_v12 = vsel %vm182_vm0, %v4316_v10, 0.0 }
 0x915   :  { %1309 = vadd.xlane.f32.xlu1 %v1308_v12  ;;  %v1305_v13 = vsel %vm182_vm0, %v4318_v11, 0.0  ;;  %v1334_v5 = vrot.slane %v4129_v61, %v1333_v3 }
 0x916   :  { %1306 = vadd.xlane.f32.xlu0 %v1305_v13 }
 0x9a2   :  { %v1310_v14 = vpop.xlane.xlu1 %1309 }
 0x9a3   :  { %v1312_v15 = vmul.f32 0.03125, %v1310_v14  ;;  %v1307_v16 = vpop.xlane.xlu0 %1306  ;;  %v1340_v14 = vrot.slane %v4129_v61, %v1339_v4 }
 0x9a4   :  { %v1311_v17 = vmul.f32 0.03125, %v1307_v16 }
 0x9a5   :  { %v4325_v30 = vsub.f32 %v4316_v10, %v1312_v15 }
 0x9a6   :  { %v4328_v29 = vsub.f32 %v4318_v11, %v1311_v17 }
 0x9a7   :  { %v1316_v18 = vmul.f32 %v4325_v30, %v4325_v30 }
 0x9a8   :  { %v1315_v21 = vmul.f32 %v4328_v29, %v4328_v29 }
 0x9a9   :  { %v1320_v26 = vsel %vm182_vm0, %v1316_v18, 0.0 }
 0x9aa   :  { %1321 = vadd.xlane.f32.xlu1 %v1320_v26  ;;  %v1317_v27 = vsel %vm182_vm0, %v1315_v21, 0.0  ;;  %v175_v21 = vld [vmem:[%s4740_s1 + $0x178] sm:$0xff]  ;;  %v1345_v26 = vsub.s32 5, %v4121_v58 }
 0x9ab   :  { %1318 = vadd.xlane.f32.xlu0 %v1317_v27 }
 0x9ac   :  { %v1346_v27 = vrot.slane %v4129_v61, %v1345_v26 }
 0xa37   :  { %v1322_v53 = vpop.xlane.xlu1 %1321 }
 0xa38   :  { %v1324_v57 = vmul.f32 0.03125, %v1322_v53  ;;  %v1319_v59 = vpop.xlane.xlu0 %1318  ;;  %v1516_v53 = vld [vmem:[%s4740_s1 + $0x1a0] sm:$0xff] }
 0xa39   :  { %v1323_v63 = vmul.f32 0.03125, %v1319_v59  ;;  %v1517_v59 = vld [vmem:[%s4740_s1 + $0x1a8] sm:$0xff] }
 0xa3a   :  { %v1326_v0 = vadd.f32 1e-05, %v1324_v57  ;;  %v3768_v57 = vpack.c.bf16 %v1516_v53, %v1515_v52 }
 0xa3b   :  { %v1325_v1 = vadd.f32 1e-05, %v1323_v63  ;;  %v1518_v63 = vld [vmem:[%s4740_s1 + $0x1b0] sm:$0xff] }
 0xa3c   :  { %3937 = vrsqrt.f32 %v1326_v0  ;;  %v3772_v0 = vpack.c.bf16 %v1518_v63, %v1517_v59 }
 0xa3d   :  { %3939 = vrsqrt.f32 %v1325_v1 }
 0xa46   :  { %v3938_v7 = vpop.eup %3937 }
 0xa47   :  { %v3940_v9 = vpop.eup %3939  ;;  %v1330_v12 = vmul.f32 %v3938_v7, %v4325_v30  ;;  %v176_v30 = vld [vmem:[%s4740_s1 + $0x180] sm:$0xff] }
 0xa48   :  { %v1329_v13 = vmul.f32 %v3940_v9, %v4328_v29  ;;  %v3760_v29 = vpack.c.bf16 %v176_v30, %v175_v21 }
 0xa49   :  { %v1336_v15 = vmul.f32 %v1334_v5, %v1330_v12 }
 0xa4a   :  { %v1335_v16 = vmul.f32 %v1334_v5, %v1329_v13  ;;  %3761 = vmatprep.subr.bf16.mxu1 %v3760_v29 }
 0xa4b   :  { %v1342_v18 = vadd.f32 %v1340_v14, %v1336_v15  ;;  %3763 = vmatpush3.bf16.msra.mxu1 %v3760_v29 }
 0xa4c   :  { %v1341_v17 = vadd.f32 %v1340_v14, %v1335_v16  ;;  %v4451_v14 = vld [vmem:[%s4741_s2 + $0x68] sm:$0xff] }
 0xa4d   :  { %v1579_v15 = vrot.slane %v4451_v14, %v4124_v60  ;;  %v1585_v30 = vrot.slane %v4451_v14, %v4132_v62 }
 0xa4e   :  { %3425 = vmatprep.mubr.msk.f32.mxu0 %vm182_vm0, %v1341_v17 }
 0xa4f   :  { %3426 = vmatmul.mubr.msk.f32.vlgmr.msra.gmra.mrb[6].mxu0 %vm182_vm0, %v1342_v18 }
 0xa50   :  { %3767 = vmatpush3.bf16.msra.mxu0 %v3764_v51 }
 0xa51   :  { %3769 = vmatprep.subr.bf16.mxu0 %v3768_v57 }
 0xa54   :  { %3771 = vmatpush3.bf16.msra.mxu0 %v3768_v57 }
 0xa55   :  { %3773 = vmatprep.subr.bf16.mxu0 %v3772_v0 }
 0xb22   :  { %v3427_v28 = vpop.f32.mrb[6].mxu0 }
 0xb23   :  { %v1425_v54 = vadd.f32 %v3427_v28, %v1346_v27  ;;  %v1419_v31 = vpop.f32.mrb[7].mxu0  ;;  %v1519_v28 = vld [vmem:[%s4740_s1 + $0x1b8] sm:$0xff] }
 0xb24   :  { %v1420_v55 = vadd.f32 %v1419_v31, %v1346_v27 }
 0xb25   :  { %v1429_v33 = vmax.f32 %v1425_v54, 0.0  ;;  %v1520_v54 = vld [vmem:[%s4740_s1 + $0x1c0] sm:$0xff] }
 0xb26   :  { %v1428_v32 = vmax.f32 %v1420_v55, 0.0 }
 0xb28   :  { %3460 = vmatprep.mubr.f32.mxu1 %v1428_v32  ;;  %v3776_v32 = vpack.c.bf16 %v1520_v54, %v1519_v28 }
 0xb29   :  { %3461 = vmatmul.mubr.f32.vlgmr.msra.gmra.mrb[14].mxu1 %v1429_v33  ;;  %v1521_v33 = vld [vmem:[%s4740_s1 + $0x1c8] sm:$0xff] }
 0xbfc   :  { %v3462_v20 = vpop.f32.mrb[14].mxu1 }
 0xbfd   :  { %v1506_v42 = vadd.f32 %v3462_v20, %v4316_v10  ;;  %v1496_v36 = vpop.f32.mrb[15].mxu1 }
 0xbfe   :  { %v1505_v37 = vadd.f32 %v1496_v36, %v4318_v11  ;;  %v1524_v36 = vld [vmem:[%s4740_s1 + $0x1e0] sm:$0xff] }
 0xbff   :  { %v4418_v39 = vadd.f32 %v1510_v35, %v1506_v42  ;;  %v1523_v42 = vld [vmem:[%s4740_s1 + $0x1d8] sm:$0xff] }
 0xc00   :  { %v4420_v40 = vadd.f32 %v1510_v35, %v1505_v37  ;;  %v1522_v35 = vld [vmem:[%s4740_s1 + $0x1d0] sm:$0xff]  ;;  %v3784_v37 = vpack.c.bf16 %v1524_v36, %v1523_v42 }
 0xc01   :  { %v1553_v19 = vsel %vm182_vm0, %v4418_v39, 0.0  ;;  %v3780_v20 = vpack.c.bf16 %v1522_v35, %v1521_v33 }
 0xc02   :  { %1554 = vadd.xlane.f32.xlu1 %v1553_v19  ;;  %v1550_v56 = vsel %vm182_vm0, %v4420_v40, 0.0 }
 0xc03   :  { %1551 = vadd.xlane.f32.xlu0 %v1550_v56 }
 0xc8f   :  { %v1555_v41 = vpop.xlane.xlu1 %1554 }
 0xc90   :  { %v1557_v61 = vmul.f32 0.03125, %v1555_v41  ;;  %v1552_v43 = vpop.xlane.xlu0 %1551 }
 0xc91   :  { %v1556_v44 = vmul.f32 0.03125, %v1552_v43 }
 0xc92   :  { %v1559_v10 = vsub.f32 %v4418_v39, %v1557_v61 }
 0xc93   :  { %v1558_v11 = vsub.f32 %v4420_v40, %v1556_v44 }
 0xc94   :  { %v1561_v45 = vmul.f32 %v1559_v10, %v1559_v10 }
 0xc95   :  { %v1560_v46 = vmul.f32 %v1558_v11, %v1558_v11 }
 0xc96   :  { %v1565_v47 = vsel %vm182_vm0, %v1561_v45, 0.0 }
 0xc97   :  { %1566 = vadd.xlane.f32.xlu1 %v1565_v47  ;;  %v1562_v48 = vsel %vm182_vm0, %v1560_v46, 0.0 }
 0xc98   :  { %1563 = vadd.xlane.f32.xlu0 %v1562_v48 }
 0xd24   :  { %v1567_v1 = vpop.xlane.xlu1 %1566 }
 0xd25   :  { %v1569_v5 = vmul.f32 0.03125, %v1567_v1  ;;  %v1564_v7 = vpop.xlane.xlu0 %1563 }
 0xd26   :  { %v1568_v9 = vmul.f32 0.03125, %v1564_v7 }
 0xd27   :  { %v1571_v12 = vadd.f32 1e-05, %v1569_v5 }
 0xd28   :  { %v1570_v13 = vadd.f32 1e-05, %v1568_v9 }
 0xd29   :  { %3941 = vrsqrt.f32 %v1571_v12 }
 0xd2a   :  { %3943 = vrsqrt.f32 %v1570_v13 }
 0xd33   :  { %v3942_v16 = vpop.eup %3941 }
 0xd34   :  { %v3944_v17 = vpop.eup %3943  ;;  %v1575_v18 = vmul.f32 %v3942_v16, %v1559_v10 }
 0xd35   :  { %v1574_v21 = vmul.f32 %v3944_v17, %v1558_v11 }
 0xd36   :  { %v1581_v29 = vmul.f32 %v1579_v15, %v1575_v18 }
 0xd37   :  { %v1580_v27 = vmul.f32 %v1579_v15, %v1574_v21 }
 0xd38   :  { %v1587_v55 = vadd.f32 %v1585_v30, %v1581_v29 }
 0xd39   :  { %v1586_v31 = vadd.f32 %v1585_v30, %v1580_v27 }
 0xd3b   :  { %3471 = vmatprep.mubr.msk.f32.mxu0 %vm182_vm0, %v1586_v31 }
 0xd3c   :  { %3472 = vmatmul.mubr.msk.f32.vlgmr.msra.gmra.mrb[8].mxu0 %vm182_vm0, %v1587_v55 }
 0xd3d   :  { %3775 = vmatpush3.bf16.msra.mxu0 %v3772_v0  ;;  %3482 = vmatprep.mubr.msk.f32.mxu0 %vm182_vm0, %v1586_v31 }
 0xd3e   :  { %3777 = vmatprep.subr.bf16.mxu0 %v3776_v32 }
 0xd41   :  { %3779 = vmatpush3.bf16.msra.mxu0 %v3776_v32 }
 0xd42   :  { %3781 = vmatprep.subr.bf16.mxu0 %v3780_v20 }
 0xd44   :  { %3483 = vmatmul.mubr.msk.f32.vlgmr.msra.gmra.mrb[10].mxu0 %vm182_vm0, %v1587_v55 }
 0xd45   :  { %3783 = vmatpush3.bf16.msra.mxu0 %v3780_v20  ;;  %3493 = vmatprep.mubr.msk.f32.mxu0 %vm182_vm0, %v1586_v31 }
 0xd46   :  { %3785 = vmatprep.subr.bf16.mxu0 %v3784_v37 }
 0xd49   :  { %3787 = vmatpush3.bf16.msra.mxu0 %v3784_v37 }
 0xd4c   :  { %3494 = vmatmul.mubr.msk.f32.vlgmr.msra.gmra.mrb[12].mxu0 %vm182_vm0, %v1587_v55 }
 0xe0f   :  { %v4481_v19 = vpop.f32.mrb[8].mxu0 }
 0xe10   :  { %v4483_v56 = vpop.f32.mrb[9].mxu0 }
 0xe11   :  { %3500 = vmatprep.mubr.msk.f32.mxu0 %vm182_vm0, %v4483_v56  ;;  %3507 = vmatprep.mubr.msk.f32.mxu1 %vm182_vm0, %v4483_v56 }
 0xe17   :  { %v3484_v41 = vpop.f32.mrb[10].mxu0 }
 0xe18   :  { %v1820_v61 = vmul.f32 %v3484_v41, %v4179_v22  ;;  %v1933_v43 = vmul.f32 %v3484_v41, %v4181_v23  ;;  %v2202_v44 = vmul.f32 %v3484_v41, %v4183_v24  ;;  %v2392_v10 = vmul.f32 %v3484_v41, %v4185_v25  ;;  %v1735_v11 = vpop.f32.mrb[11].mxu0 }
 0xe19   :  { %v1819_v45 = vmul.f32 %v4179_v22, %v1735_v11  ;;  %v1932_v46 = vmul.f32 %v4181_v23, %v1735_v11  ;;  %v2201_v47 = vmul.f32 %v4183_v24, %v1735_v11  ;;  %v2391_v48 = vmul.f32 %v4185_v25, %v1735_v11 }
 0xe1b   :  { %v3788_v49 = vpack.c.bf16 %v1820_v61, %v1819_v45  ;;  %v3794_v50 = vpack.c.bf16 %v1933_v43, %v1932_v46  ;;  %v4497_v51 = vpack.c.bf16 %v2202_v44, %v2201_v47  ;;  %v4499_v52 = vpack.c.bf16 %v2392_v10, %v2391_v48 }
 0xe1d   :  { %3790 = vmatprep.subr.msk.bf16.mxu0 %vm4197_vm11, %v3788_v49  ;;  %3796 = vmatprep.subr.msk.bf16.mxu1 %vm4197_vm11, %v3794_v50 }
 0xe1e   :  { %3793 = vmatpush3.bf16.xpose.msk.msra.mxu0 %vm4197_vm11, %v3788_v49  ;;  %3799 = vmatpush3.bf16.xpose.msk.msra.mxu1 %vm4197_vm11, %v3794_v50 }
 0xe1f   :  { %v3495_v53 = vpop.f32.mrb[12].mxu0 }
 0xe20   :  { %v1931_v57 = vmul.f32 %v3495_v53, %v4179_v22  ;;  %v2038_v59 = vmul.f32 %v3495_v53, %v4181_v23  ;;  %v2307_v63 = vmul.f32 %v3495_v53, %v4183_v24  ;;  %v2497_v0 = vmul.f32 %v3495_v53, %v4185_v25  ;;  %v1810_v1 = vpop.f32.mrb[13].mxu0 }
 0xe21   :  { %v1930_v5 = vmul.f32 %v4179_v22, %v1810_v1  ;;  %v2037_v7 = vmul.f32 %v4181_v23, %v1810_v1  ;;  %v2306_v9 = vmul.f32 %v4183_v24, %v1810_v1  ;;  %v2496_v12 = vmul.f32 %v4185_v25, %v1810_v1 }
 0xe23   :  { %v3800_v13 = vpack.c.bf16 %v2038_v59, %v2037_v7  ;;  %v3804_v15 = vpack.c.bf16 %v1931_v57, %v1930_v5  ;;  %v4517_v16 = vpack.c.bf16 %v2307_v63, %v2306_v9  ;;  %v4519_v17 = vpack.c.bf16 %v2497_v0, %v2496_v12 }
 0xe25   :  { %3501 = vmatmul.mubr.msk.f32.vlgmr.msra.gmra.mrb[14].mxu0 %vm182_vm0, %v4481_v19  ;;  %3508 = vmatmul.mubr.msk.f32.vlgmr.msra.gmra.mrb[16].mxu1 %vm182_vm0, %v4481_v19 }
 0xe26   :  { %3801 = vmatprep.subr.bf16.mxu1 %v3800_v13  ;;  %3805 = vmatprep.subr.bf16.mxu0 %v3804_v15 }
 0xe27   :  { %3803 = vmatpush3.bf16.msra.mxu1 %v3800_v13  ;;  %3807 = vmatpush3.bf16.msra.mxu0 %v3804_v15 }
 0xe28   :  { %3810 = vmatprep.subr.msk.bf16.mxu1 %vm4197_vm11, %v4497_v51  ;;  %3815 = vmatprep.subr.bf16.mxu0 %v4517_v16 }
 0xef8   :  { %v3502_v22 = vpop.f32.mrb[14].mxu0  ;;  %v3509_v23 = vpop.f32.mrb[16].mxu1 }
 0xef9   :  { %v2012_v24 = vadd.f32 %v3509_v23, %v4244_v6  ;;  %v1899_v25 = vpop.f32.mrb[15].mxu0  ;;  %v2006_v18 = vpop.f32.mrb[17].mxu1  ;;  %v1905_v20 = vadd.f32 %v3502_v22, %v4244_v6 }
 0xefa   :  { %v2007_v21 = vadd.f32 %v2006_v18, %v4246_v8  ;;  %v1900_v36 = vadd.f32 %v1899_v25, %v4246_v8 }
 0xefb   :  { %v2018_v30 = vsel %vm542_vm3, %v2012_v24, -inf  ;;  %v1911_v41 = vsel %vm542_vm3, %v1905_v20, -inf }
 0xefc   :  { %2019 = vmax.xlane.f32.xlu1 %v2018_v30  ;;  %v2015_v29 = vsel %vm542_vm3, %v2007_v21, -inf  ;;  %v1908_v61 = vsel %vm542_vm3, %v1900_v36, -inf }
 0xefd   :  { %2016 = vmax.xlane.f32.xlu0 %v2015_v29 }
 0xf89   :  { %v2020_v27 = vpop.xlane.xlu1 %2019 }
 0xf8a   :  { %v2022_v28 = vsub.f32 %v2012_v24, %v2020_v27  ;;  %v2017_v54 = vpop.xlane.xlu0 %2016 }
 0xf8b   :  { %v2021_v31 = vsub.f32 %v2007_v21, %v2017_v54 }
 0xf8c   :  { %v2025_v55 = vmul.f32 1.442695, %v2022_v28 }
 0xf8d   :  { %v2023_v32 = vmul.f32 1.442695, %v2021_v31 }
 0xf8e   :  { %3945 = vpow2.f32 %v2025_v55 }
 0xf8f   :  { %3947 = vpow2.f32 %v2023_v32 }
 0xf98   :  { %v3946_v33 = vpop.eup %3945 }
 0xf99   :  { %v3948_v35 = vpop.eup %3947  ;;  %v2030_v42 = vsel %vm542_vm3, %v3946_v33, 0.0 }
 0xf9a   :  { %2031 = vadd.xlane.f32.xlu1 %v2030_v42  ;;  %v2027_v37 = vsel %vm542_vm3, %v3948_v35, 0.0 }
 0xf9b   :  { %2028 = vadd.xlane.f32.xlu0 %v2027_v37 }
 0xf9e   :  { %1912 = vmax.xlane.f32.xlu1 %v1911_v41 }
 0xf9f   :  { %1909 = vmax.xlane.f32.xlu0 %v1908_v61 }
0x1027   :  { %v2032_v43 = vpop.xlane.xlu1 %2031 }
0x1028   :  { %3949 = vrcp.f32 %v2032_v43  ;;  %v2029_v44 = vpop.xlane.xlu0 %2028 }
0x1029   :  { %3951 = vrcp.f32 %v2029_v44 }
0x102b   :  { %v1913_v47 = vpop.xlane.xlu1 %1912 }
0x102c   :  { %v1910_v48 = vpop.xlane.xlu0 %1909 }
0x102d   :  { %v1914_v53 = vsub.f32 %v1900_v36, %v1910_v48 }
0x102f   :  { %v1916_v59 = vmul.f32 1.442695, %v1914_v53 }
0x1032   :  { %v3950_v10 = vpop.eup %3949 }
0x1033   :  { %v3952_v11 = vpop.eup %3951  ;;  %v2036_v46 = vmul.f32 %v3950_v10, %v3946_v33 }
0x1034   :  { %v2034_v45 = vmul.f32 %v3952_v11, %v3948_v35 }
0x1036   :  { %3514 = vmatprep.mubr.msk.f32.mxu1 %vm542_vm3, %v2034_v45 }
0x1037   :  { %3515 = vmatmul.mubr.msk.f32.vlgmr.msra.gmra.mrb[18].mxu1 %vm542_vm3, %v2036_v46 }
0x1038   :  { %3813 = vmatpush3.bf16.xpose.msk.msra.mxu1 %vm4197_vm11, %v4497_v51  ;;  %3528 = vmatprep.mubr.msk.f32.mxu1 %vm182_vm0, %v4483_v56  ;;  %v1915_v51 = vsub.f32 %v1905_v20, %v1913_v47 }
0x1039   :  { %3820 = vmatprep.subr.msk.bf16.mxu1 %vm4197_vm11, %v4499_v52 }
0x103a   :  { %v1918_v57 = vmul.f32 1.442695, %v1915_v51 }
0x103c   :  { %3953 = vpow2.f32 %v1918_v57  ;;  %v1525_v57 = vld [vmem:[%s4740_s1 + $0x1e8] sm:$0xff] }
0x103d   :  { %3955 = vpow2.f32 %v1916_v59  ;;  %v1526_v59 = vld [vmem:[%s4740_s1 + $0x1f0] sm:$0xff] }
0x103f   :  { %3529 = vmatmul.mubr.msk.f32.vlgmr.msra.gmra.mrb[20].mxu1 %vm182_vm0, %v4481_v19 }
0x1040   :  { %3823 = vmatpush3.bf16.xpose.msk.msra.mxu1 %vm4197_vm11, %v4499_v52  ;;  %3542 = vmatprep.mubr.msk.f32.mxu1 %vm182_vm0, %v4483_v56 }
0x1046   :  { %v3954_v13 = vpop.eup %3953 }
0x1047   :  { %3543 = vmatmul.mubr.msk.f32.vlgmr.msra.gmra.mrb[22].mxu1 %vm182_vm0, %v4481_v19  ;;  %v3956_v22 = vpop.eup %3955  ;;  %v1923_v23 = vsel %vm542_vm3, %v3954_v13, 0.0 }
0x1048   :  { %v1920_v24 = vsel %vm542_vm3, %v3956_v22, 0.0 }
0x110a   :  { %v4558_v49 = vpop.f32.mrb[18].mxu1 }
0x110b   :  { %v4560_v50 = vpop.f32.mrb[19].mxu1 }
0x1112   :  { %v3530_v63 = vpop.f32.mrb[20].mxu1 }
0x1113   :  { %v2281_v38 = vadd.f32 %v3530_v63, %v4244_v6  ;;  %v2275_v52 = vpop.f32.mrb[21].mxu1 }
0x1114   :  { %v2276_v56 = vadd.f32 %v2275_v52, %v4246_v8  ;;  %v3828_v52 = vpack.c.bf16 %v1526_v59, %v1525_v57  ;;  %v1538_v57 = vld [vmem:[%s4740_s1 + $0x250] sm:$0xff] }
0x1115   :  { %v2287_v19 = vsel %vm542_vm3, %v2281_v38, -inf }
0x1116   :  { %2288 = vmax.xlane.f32.xlu1 %v2287_v19  ;;  %v2284_v0 = vsel %vm542_vm3, %v2276_v56, -inf }
0x1117   :  { %2285 = vmax.xlane.f32.xlu0 %v2284_v0 }
0x111a   :  { %v3544_v1 = vpop.f32.mrb[22].mxu1 }
0x111b   :  { %v2471_v5 = vadd.f32 %v3544_v1, %v4244_v6  ;;  %v2465_v7 = vpop.f32.mrb[23].mxu1 }
0x111c   :  { %v2466_v9 = vadd.f32 %v2465_v7, %v4246_v8  ;;  %v1528_v7 = vld [vmem:[%s4740_s1 + $0x200] sm:$0xff] }
0x111d   :  { %v2477_v12 = vsel %vm542_vm3, %v2471_v5, -inf }
0x111e   :  { %2478 = vmax.xlane.f32.xlu1 %v2477_v12  ;;  %v2474_v15 = vsel %vm542_vm3, %v2466_v9, -inf }
0x111f   :  { %2475 = vmax.xlane.f32.xlu0 %v2474_v15 }
0x1122   :  { %1924 = vadd.xlane.f32.xlu1 %v1923_v23 }
0x1123   :  { %1921 = vadd.xlane.f32.xlu0 %v1920_v24 }
0x11a3   :  { %v2289_v25 = vpop.xlane.xlu1 %2288 }
0x11a4   :  { %v2291_v18 = vsub.f32 %v2281_v38, %v2289_v25  ;;  %v2286_v6 = vpop.xlane.xlu0 %2285 }
0x11a5   :  { %v2290_v21 = vsub.f32 %v2276_v56, %v2286_v6 }
0x11a6   :  { %v2294_v30 = vmul.f32 1.442695, %v2291_v18 }
0x11a7   :  { %v2292_v8 = vmul.f32 1.442695, %v2290_v21 }
0x11a8   :  { %3957 = vpow2.f32 %v2294_v30 }
0x11a9   :  { %3959 = vpow2.f32 %v2292_v8 }
0x11ab   :  { %v2479_v29 = vpop.xlane.xlu1 %2478 }
0x11ac   :  { %v2481_v27 = vsub.f32 %v2471_v5, %v2479_v29  ;;  %v2476_v28 = vpop.xlane.xlu0 %2475  ;;  %v1527_v5 = vld [vmem:[%s4740_s1 + $0x1f8] sm:$0xff] }
0x11ad   :  { %v2480_v54 = vsub.f32 %v2466_v9, %v2476_v28  ;;  %v3832_v9 = vpack.c.bf16 %v1528_v7, %v1527_v5 }
0x11ae   :  { %v2484_v31 = vmul.f32 1.442695, %v2481_v27 }
0x11af   :  { %v2482_v55 = vmul.f32 1.442695, %v2480_v54  ;;  %v1925_v32 = vpop.xlane.xlu1 %1924 }
0x11b0   :  { %3961 = vpow2.f32 %v2484_v31  ;;  %v1922_v33 = vpop.xlane.xlu0 %1921 }
0x11b1   :  { %3963 = vpow2.f32 %v2482_v55 }
0x11b2   :  { %v3958_v35 = vpop.eup %3957  ;;  %3965 = vrcp.f32 %v1925_v32  ;;  %v1545_v32 = vld [vmem:[%s4741_s2 + $0x20] sm:$0xff] }
0x11b3   :  { %v3960_v20 = vpop.eup %3959  ;;  %3967 = vrcp.f32 %v1922_v33  ;;  %v2299_v42 = vsel %vm542_vm3, %v3958_v35, 0.0  ;;  %v1546_v33 = vld [vmem:[%s4741_s2 + $0x28] sm:$0xff] }
0x11b4   :  { %2300 = vadd.xlane.f32.xlu1 %v2299_v42  ;;  %v2296_v36 = vsel %vm542_vm3, %v3960_v20, 0.0  ;;  %v1548_v42 = vld [vmem:[%s4741_s2 + $0x38] sm:$0xff] }
0x11b5   :  { %2297 = vadd.xlane.f32.xlu0 %v2296_v36 }
0x11ba   :  { %v3962_v37 = vpop.eup %3961 }
0x11bb   :  { %v3964_v41 = vpop.eup %3963  ;;  %v2489_v61 = vsel %vm542_vm3, %v3962_v37, 0.0 }
0x11bc   :  { %v3966_v43 = vpop.eup %3965  ;;  %2490 = vadd.xlane.f32.xlu1 %v2489_v61  ;;  %v2486_v44 = vsel %vm542_vm3, %v3964_v41, 0.0  ;;  %v1531_v61 = vld [vmem:[%s4740_s1 + $0x218] sm:$0xff] }
0x11bd   :  { %v3968_v10 = vpop.eup %3967  ;;  %2487 = vadd.xlane.f32.xlu0 %v2486_v44  ;;  %v1929_v45 = vmul.f32 %v3966_v43, %v3954_v13  ;;  %v1532_v44 = vld [vmem:[%s4740_s1 + $0x220] sm:$0xff] }
0x11be   :  { %v1927_v11 = vmul.f32 %v3968_v10, %v3956_v22  ;;  %v2667_v22 = vrot.slane %v4451_v14, %v4310_v2  ;;  %v3848_v10 = vpack.c.bf16 %v1532_v44, %v1531_v61 }
0x11c0   :  { %3521 = vmatprep.mubr.msk.f32.mxu0 %vm542_vm3, %v1927_v11  ;;  %v1533_v11 = vld [vmem:[%s4740_s1 + $0x228] sm:$0xff] }
0x11c1   :  { %3522 = vmatmul.mubr.msk.f32.vlgmr.msra.gmra.mrb[16].mxu0 %vm542_vm3, %v1929_v45  ;;  %v1534_v45 = vld [vmem:[%s4740_s1 + $0x230] sm:$0xff] }
0x11c2   :  { %3817 = vmatpush3.bf16.msra.mxu0 %v4517_v16 }
0x11c3   :  { %3825 = vmatprep.subr.bf16.mxu0 %v4519_v17 }
0x1241   :  { %v2301_v46 = vpop.xlane.xlu1 %2300 }
0x1242   :  { %3969 = vrcp.f32 %v2301_v46  ;;  %v2298_v47 = vpop.xlane.xlu0 %2297  ;;  %v3852_v46 = vpack.c.bf16 %v1534_v45, %v1533_v11  ;;  %v2880_v11 = vld [vmem:[%s4741_s2 + $0x48] sm:$0xff]  ;;  %v2881_v45 = vld [vmem:[%s4741_s2 + $0x50] sm:$0xff] }
0x1243   :  { %3971 = vrcp.f32 %v2298_v47  ;;  %v1535_v47 = vld [vmem:[%s4740_s1 + $0x238] sm:$0xff] }
0x1249   :  { %v2491_v48 = vpop.xlane.xlu1 %2490 }
0x124a   :  { %3973 = vrcp.f32 %v2491_v48  ;;  %v2488_v51 = vpop.xlane.xlu0 %2487  ;;  %v1536_v48 = vld [vmem:[%s4740_s1 + $0x240] sm:$0xff] }
0x124b   :  { %3975 = vrcp.f32 %v2488_v51  ;;  %v3856_v51 = vpack.c.bf16 %v1536_v48, %v1535_v47  ;;  %v2882_v47 = vld [vmem:[%s4741_s2 + $0x58] sm:$0xff] }
0x124c   :  { %v3970_v53 = vpop.eup %3969  ;;  %v3880_v48 = vpack.c.bf16 %v2882_v47, %v2881_v45 }
0x124d   :  { %v3972_v16 = vpop.eup %3971  ;;  %v2305_v38 = vmul.f32 %v3970_v53, %v3958_v35  ;;  %v1547_v35 = vld [vmem:[%s4741_s2 + $0x30] sm:$0xff]  ;;  %v1537_v53 = vld [vmem:[%s4740_s1 + $0x248] sm:$0xff] }
0x124e   :  { %v2303_v63 = vmul.f32 %v3972_v16, %v3960_v20  ;;  %v3836_v20 = vpack.c.bf16 %v1546_v33, %v1545_v32  ;;  %v3840_v36 = vpack.c.bf16 %v1548_v42, %v1547_v35  ;;  %v3860_v59 = vpack.c.bf16 %v1538_v57, %v1537_v53  ;;  %v1539_v16 = vld [vmem:[%s4740_s1 + $0x258] sm:$0xff] }
0x1250   :  { %3535 = vmatprep.mubr.msk.f32.mxu0 %vm542_vm3, %v2303_v63  ;;  %3837 = vmatprep.subr.bf16.mxu1 %v3836_v20  ;;  %v1540_v63 = vld [vmem:[%s4740_s1 + $0x260] sm:$0xff] }
0x1251   :  { %3536 = vmatmul.mubr.msk.f32.vlgmr.msra.gmra.mrb[16].mxu0 %vm542_vm3, %v2305_v38  ;;  %3839 = vmatpush3.bf16.msra.mxu1 %v3836_v20  ;;  %v3864_v38 = vpack.c.bf16 %v1540_v63, %v1539_v16 }
0x1252   :  { %3827 = vmatpush3.bf16.msra.mxu0 %v4519_v17  ;;  %3841 = vmatprep.subr.bf16.mxu1 %v3840_v36 }
0x1253   :  { %3829 = vmatprep.subr.bf16.mxu0 %v3828_v52 }
0x1254   :  { %v3974_v56 = vpop.eup %3973 }
0x1255   :  { %v3976_v19 = vpop.eup %3975  ;;  %v2495_v1 = vmul.f32 %v3974_v56, %v3962_v37  ;;  %3843 = vmatpush3.bf16.msra.mxu1 %v3840_v36  ;;  %v1529_v37 = vld [vmem:[%s4740_s1 + $0x208] sm:$0xff]  ;;  %v1542_v56 = vld [vmem:[%s4740_s1 + $0x270] sm:$0xff] }
0x1256   :  { %v2493_v0 = vmul.f32 %v3976_v19, %v3964_v41  ;;  %v1530_v41 = vld [vmem:[%s4740_s1 + $0x210] sm:$0xff] }
0x1257   :  { %v3844_v43 = vpack.c.bf16 %v1530_v41, %v1529_v37 }
0x1258   :  { %3549 = vmatprep.mubr.msk.f32.mxu0 %vm542_vm3, %v2493_v0 }
0x1259   :  { %3550 = vmatmul.mubr.msk.f32.vlgmr.msra.gmra.mrb[16].mxu0 %vm542_vm3, %v2495_v1 }
0x125a   :  { %3831 = vmatpush3.bf16.msra.mxu0 %v3828_v52  ;;  %v1541_v52 = vld [vmem:[%s4740_s1 + $0x268] sm:$0xff] }
0x125b   :  { %3833 = vmatprep.subr.bf16.mxu0 %v3832_v9  ;;  %v3868_v19 = vpack.c.bf16 %v1542_v56, %v1541_v52 }
0x125e   :  { %3835 = vmatpush3.bf16.msra.mxu0 %v3832_v9 }
0x125f   :  { %3845 = vmatprep.subr.bf16.mxu0 %v3844_v43 }
0x132c   :  { %v3551_v17 = vpop.f32.mrb[16].mxu0 }
0x132d   :  { %v3884_v12 = vadd.f32 %v3551_v17, %v4558_v49  ;;  %v2570_v13 = vpop.f32.mrb[17].mxu0 }
0x132e   :  { %v3885_v15 = vadd.f32 %v2570_v13, %v4560_v50 }
0x1330   :  { %3560 = vmatprep.mubr.msk.f32.mxu0 %vm182_vm0, %v3885_v15 }
0x1331   :  { %3561 = vmatmul.mubr.msk.f32.vlgmr.msra.gmra.mrb[18].mxu0 %vm182_vm0, %v3884_v12  ;;  %v2699_v12 = vrot.slane %v4451_v14, %v1333_v3  ;;  %v1543_v3 = vld [vmem:[%s4740_s1 + $0x278] sm:$0xff] }
0x1332   :  { %3847 = vmatpush3.bf16.msra.mxu0 %v3844_v43 }
0x1333   :  { %3849 = vmatprep.subr.bf16.mxu0 %v3848_v10 }
0x1336   :  { %3851 = vmatpush3.bf16.msra.mxu0 %v3848_v10  ;;  %v2879_v10 = vld [vmem:[%s4741_s2 + $0x40] sm:$0xff] }
0x1337   :  { %3853 = vmatprep.subr.bf16.mxu0 %v3852_v46 }
0x133a   :  { %3855 = vmatpush3.bf16.msra.mxu0 %v3852_v46  ;;  %v3876_v46 = vpack.c.bf16 %v2880_v11, %v2879_v10 }
0x133b   :  { %3857 = vmatprep.subr.bf16.mxu0 %v3856_v51 }
0x133c   :  { %3877 = vmatprep.subr.bf16.mxu1 %v3876_v46 }
0x133e   :  { %3859 = vmatpush3.bf16.msra.mxu0 %v3856_v51 }
0x133f   :  { %3861 = vmatprep.subr.bf16.mxu0 %v3860_v59 }
0x1342   :  { %3863 = vmatpush3.bf16.msra.mxu0 %v3860_v59 }
0x1343   :  { %3865 = vmatprep.subr.bf16.mxu0 %v3864_v38 }
0x1346   :  { %3867 = vmatpush3.bf16.msra.mxu0 %v3864_v38  ;;  %v2878_v38 = vld [vmem:[%s4741_s2 + $0x70] sm:$0xff]  ;;  %s3013_s2 = sshll.u32 %s4011_s12, 4  ;;  %s3014_s2 = int_to_ptr.vmem [resolvable:$true] %s3013_s2 }
0x1347   :  { %3869 = vmatprep.subr.bf16.mxu0 %v3868_v19  ;;  %v2912_v52 = vrot.slane %v2878_v38, %v4124_v60  ;;  %s3985_s13 = scalar_lea.vmem %s3014_s2, 256  ;;  %p3990_p1 = scmp.lt.s32.totalorder %s3014_s2, %s3014_s2 }
0x1348   :  { %p3986_p0 = scmp.ne.s32.totalorder %s3014_s2, %s3985_s13  ;;  %p3991_p2 = scmp.lt.s32.totalorder %s3985_s13, %s3985_s13 }
0x134a   :  { %3871 = vmatpush3.bf16.msra.mxu0 %v3868_v19  ;;  %p3992_p3 = por %p3991_p2, %p3990_p1 }
0x134c   :  { %p3993_p4 = pnand %p3992_p3, %p3986_p0 }
0x1404   :  { %v3562_v23 = vpop.f32.mrb[18].mxu0 }
0x1405   :  { %v2663_v24 = vadd.f32 %v3562_v23, %v4418_v39  ;;  %v2653_v25 = vpop.f32.mrb[19].mxu0 }
0x1406   :  { %v2662_v18 = vadd.f32 %v2653_v25, %v4420_v40 }
0x1407   :  { %v4605_v6 = vadd.f32 %v2667_v22, %v2663_v24  ;;  %v2705_v24 = vrot.slane %v4451_v14, %v1339_v4  ;;  %v2711_v4 = vrot.slane %v4451_v14, %v1345_v26 }
0x1408   :  { %v4607_v21 = vadd.f32 %v2667_v22, %v2662_v18 }
0x1409   :  { %v2673_v49 = vsel %vm182_vm0, %v4605_v6, 0.0 }
0x140a   :  { %2674 = vadd.xlane.f32.xlu1 %v2673_v49  ;;  %v2670_v50 = vsel %vm182_vm0, %v4607_v21, 0.0 }
0x140b   :  { %2671 = vadd.xlane.f32.xlu0 %v2670_v50 }
0x1497   :  { %v2675_v30 = vpop.xlane.xlu1 %2674 }
0x1498   :  { %v2677_v8 = vmul.f32 0.03125, %v2675_v30  ;;  %v2672_v29 = vpop.xlane.xlu0 %2671  ;;  %v1544_v30 = vld [vmem:[%s4740_s1 + $0x280] sm:$0xff] }
0x1499   :  { %v2676_v27 = vmul.f32 0.03125, %v2672_v29 }
0x149a   :  { %v4614_v39 = vsub.f32 %v4605_v6, %v2677_v8  ;;  %v3872_v8 = vpack.c.bf16 %v1544_v30, %v1543_v3 }
0x149b   :  { %v4617_v40 = vsub.f32 %v4607_v21, %v2676_v27 }
0x149c   :  { %v2681_v28 = vmul.f32 %v4614_v39, %v4614_v39  ;;  %3873 = vmatprep.subr.bf16.mxu0 %v3872_v8 }
0x149d   :  { %v2680_v54 = vmul.f32 %v4617_v40, %v4617_v40  ;;  %3875 = vmatpush3.bf16.msra.mxu0 %v3872_v8 }
0x149e   :  { %v2685_v31 = vsel %vm182_vm0, %v2681_v28, 0.0 }
0x149f   :  { %2686 = vadd.xlane.f32.xlu1 %v2685_v31  ;;  %v2682_v55 = vsel %vm182_vm0, %v2680_v54, 0.0  ;;  %v2875_v31 = vrot.slane %v4451_v14, %v1509_v34 }
0x14a0   :  { %2683 = vadd.xlane.f32.xlu0 %v2682_v55 }
0x152c   :  { %v2687_v0 = vpop.xlane.xlu1 %2686 }
0x152d   :  { %v2689_v1 = vmul.f32 0.03125, %v2687_v0  ;;  %v2684_v5 = vpop.xlane.xlu0 %2683 }
0x152e   :  { %v2688_v7 = vmul.f32 0.03125, %v2684_v5  ;;  %v2918_v5 = vrot.slane %v2878_v38, %v4132_v62 }
0x152f   :  { %v2691_v9 = vadd.f32 1e-05, %v2689_v1 }
0x1530   :  { %v2690_v17 = vadd.f32 1e-05, %v2688_v7 }
0x1531   :  { %3977 = vrsqrt.f32 %v2691_v9 }
0x1532   :  { %3979 = vrsqrt.f32 %v2690_v17 }
0x153b   :  { %v3978_v13 = vpop.eup %3977 }
0x153c   :  { %v3980_v15 = vpop.eup %3979  ;;  %v2695_v22 = vmul.f32 %v3978_v13, %v4614_v39  ;;  %v2924_v13 = vrot.slane %v2878_v38, %v4310_v2 }
0x153d   :  { %v2694_v23 = vmul.f32 %v3980_v15, %v4617_v40 }
0x153e   :  { %v2701_v25 = vmul.f32 %v2699_v12, %v2695_v22 }
0x153f   :  { %v2700_v18 = vmul.f32 %v2699_v12, %v2694_v23 }
0x1540   :  { %v2707_v50 = vadd.f32 %v2705_v24, %v2701_v25 }
0x1541   :  { %v2706_v49 = vadd.f32 %v2705_v24, %v2700_v18 }
0x1543   :  { %3571 = vmatprep.mubr.msk.f32.mxu1 %vm182_vm0, %v2706_v49 }
0x1544   :  { %3572 = vmatmul.mubr.msk.f32.vlgmr.msra.gmra.mrb[24].mxu1 %vm182_vm0, %v2707_v50 }
0x1545   :  { %3879 = vmatpush3.bf16.msra.mxu1 %v3876_v46 }
0x1546   :  { %3881 = vmatprep.subr.bf16.mxu1 %v3880_v48 }
0x1549   :  { %3883 = vmatpush3.bf16.msra.mxu1 %v3880_v48 }
0x1617   :  { %v3573_v29 = vpop.f32.mrb[24].mxu1 }
0x1618   :  { %v2790_v27 = vadd.f32 %v3573_v29, %v2711_v4  ;;  %v2784_v39 = vpop.f32.mrb[25].mxu1 }
0x1619   :  { %v2785_v40 = vadd.f32 %v2784_v39, %v2711_v4 }
0x161a   :  { %v2794_v54 = vmax.f32 %v2790_v27, 0.0 }
0x161b   :  { %v2793_v28 = vmax.f32 %v2785_v40, 0.0 }
0x161d   :  { %3606 = vmatprep.mubr.f32.mxu0 %v2793_v28 }
0x161e   :  { %3607 = vmatmul.mubr.f32.vlgmr.msra.gmra.mrb[20].mxu0 %v2794_v54 }
0x16f1   :  { %v3608_v55 = vpop.f32.mrb[20].mxu0 }
0x16f2   :  { %v2871_v32 = vadd.f32 %v3608_v55, %v4605_v6  ;;  %v2861_v33 = vpop.f32.mrb[21].mxu0 }
0x16f3   :  { %v2870_v35 = vadd.f32 %v2861_v33, %v4607_v21 }
0x16f4   :  { %v2877_v20 = vadd.f32 %v2875_v31, %v2871_v32 }
0x16f5   :  { %v2876_v26 = vadd.f32 %v2875_v31, %v2870_v35 }
0x16f6   :  { %v2886_v42 = vsel %vm182_vm0, %v2877_v20, 0.0 }
0x16f7   :  { %2887 = vadd.xlane.f32.xlu1 %v2886_v42  ;;  %v2883_v36 = vsel %vm182_vm0, %v2876_v26, 0.0 }
0x16f8   :  { %2884 = vadd.xlane.f32.xlu0 %v2883_v36 }
0x1784   :  { %v2888_v37 = vpop.xlane.xlu1 %2887 }
0x1785   :  { %v2890_v41 = vmul.f32 0.03125, %v2888_v37  ;;  %v2885_v61 = vpop.xlane.xlu0 %2884 }
0x1786   :  { %v2889_v58 = vmul.f32 0.03125, %v2885_v61 }
0x1787   :  { %v2892_v43 = vsub.f32 %v2877_v20, %v2890_v41 }
0x1788   :  { %v2891_v34 = vsub.f32 %v2876_v26, %v2889_v58 }
0x1789   :  { %v2894_v14 = vmul.f32 %v2892_v43, %v2892_v43 }
0x178a   :  { %v2893_v44 = vmul.f32 %v2891_v34, %v2891_v34 }
0x178b   :  { %v2898_v6 = vsel %vm182_vm0, %v2894_v14, 0.0 }
0x178c   :  { %2899 = vadd.xlane.f32.xlu1 %v2898_v6  ;;  %v2895_v21 = vsel %vm182_vm0, %v2893_v44, 0.0 }
0x178d   :  { %2896 = vadd.xlane.f32.xlu0 %v2895_v21 }
0x1819   :  { %v2900_v51 = vpop.xlane.xlu1 %2899 }
0x181a   :  { %v2902_v53 = vmul.f32 0.03125, %v2900_v51  ;;  %v2897_v57 = vpop.xlane.xlu0 %2896 }
0x181b   :  { %v2901_v59 = vmul.f32 0.03125, %v2897_v57 }
0x181c   :  { %v2904_v16 = vadd.f32 1e-05, %v2902_v53 }
0x181d   :  { %v2903_v63 = vadd.f32 1e-05, %v2901_v59 }
0x181e   :  { %3981 = vrsqrt.f32 %v2904_v16 }
0x181f   :  { %3983 = vrsqrt.f32 %v2903_v63 }
0x1828   :  { %v3982_v56 = vpop.eup %3981 }
0x1829   :  { %v3984_v19 = vpop.eup %3983  ;;  %v2908_v0 = vmul.f32 %v3982_v56, %v2892_v43 }
0x182a   :  { %v2907_v1 = vmul.f32 %v3984_v19, %v2891_v34 }
0x182b   :  { %v2914_v7 = vmul.f32 %v2912_v52, %v2908_v0 }
0x182c   :  { %v2913_v9 = vmul.f32 %v2912_v52, %v2907_v1 }
0x182d   :  { %v2920_v12 = vadd.f32 %v2918_v5, %v2914_v7 }
0x182e   :  { %v2919_v17 = vadd.f32 %v2918_v5, %v2913_v9 }
0x1830   :  { %3617 = vmatprep.mubr.msk.f32.mxu1 %vm182_vm0, %v2919_v17 }
0x1831   :  { %3618 = vmatmul.mubr.msk.f32.vlgmr.msra.gmra.mrb[26].mxu1 %vm182_vm0, %v2920_v12 }
0x1904   :  { %v3619_v15 = vpop.f32.mrb[26].mxu1 }
0x1905   :  { %v3003_v60 = vadd.f32 %v3619_v15, %v2924_v13  ;;  %v2997_v22 = vpop.f32.mrb[27].mxu1 }
0x1906   :  { %v2998_v23 = vadd.f32 %v2997_v22, %v2924_v13 }
0x1907   :  { %3007 = vst [vmem:[#allocation2 + $0x8] sm:$0xff] %v3003_v60 }
0x1908   :  { %3006 = vst [vmem:[#allocation2] sm:$0xff] %v2998_v23 }
0x1909   :  { %3996 = shalt.err (!%p3993_p4)
}
0x190a   :  { %s3997_s16 = scalar_lea.hbm %s4742_s3, 256 }
0x190b   :  { %p3998_p5 = scmp.ne.s32.totalorder %s4742_s3, %s3997_s16  ;;  %p4001_p6 = scmp.lt.u32.totalorder %s3997_s16, %s4742_s3 }
0x190d   :  { %p4003_p7 = pnand %p4001_p6, %p3998_p5 }
0x190f   :  { %4006 = shalt.err (!%p4003_p7)
}
0x1910   :  { %s4012_s21 = smov 128   ;;  %s4013_s22 = smov 8  }
0x1911   :  { %3019 = dma.vmem_to_hbm [thread:$0]  %s3014_s2, 256, %s4742_s3, [#allocation3], %s4012_s21, %s4012_s21, %s4013_s22  }
0x1912   :  { %4007 = dma.done.wait [#allocation3], 256  }
0x1913   :  { %4008 = vsyncadd [#allocation3], 4294967040 }
0x1914   :  { %3023 = vsyncpa [#allocation3], 1 }

</bundles_post_ra>
